<compile_context>
chip_gen: v7x
topology: tpu7x:2x2x1
jax: 0.10.0
libtpu: 0.0.40
codegen_flags: <defaults>
</compile_context>

<pallas_src>
import math
import functools

import jax
import jax.numpy as jnp
from jax.experimental import pallas as pl
from jax.experimental.pallas import tpu as pltpu

BN_EPS = 1e-5
SP_THRESH = 20.0   # PyTorch nn.Softplus(beta=1, threshold=20)


# ----------------------------------------------------------------------------
# Fused kernel.  All activations are lane-dense (C, N*H*W) f32.
# ----------------------------------------------------------------------------
def bskipadd_kernel(x_ref, hpos_ref, wpos_ref, w0_ref, w1_ref, w2_ref, o_ref,
                    *, N, H, W, ksizes, dils):
    NHW = N * H * W
    inv_n = 1.0 / float(NHW)

    # (1, NHW) int32 spatial coordinates of each flat position (precomputed
    # host-side; shared by every tap's border mask).
    h_idx = hpos_ref[...]
    w_idx = wpos_ref[...]

    # Trace-time memo so identical (dh, dw) offsets (e.g. conv0 and conv2,
    # both k=3/d=1) reuse the same mask value.
    mask_cache = {}

    def border_mask(dh, dw):
        key = (dh, dw)
        if key not in mask_cache:
            conds = []
            if dh < 0:
                conds.append(h_idx >= -dh)
            if dh > 0:
                conds.append(h_idx < H - dh)
            if dw < 0:
                conds.append(w_idx >= -dw)
            if dw > 0:
                conds.append(w_idx < W - dw)
            m = None
            for c in conds:
                m = c if m is None else (m & c)
            mask_cache[key] = m            # None for the center tap
        return mask_cache[key]

    def softplus_bn(y):
        # softplus (threshold=20) + training-mode BatchNorm2d (batch stats,
        # biased var; fresh-module gamma=1 / beta=0 folded away).
        # One-pass stats; reductions run along the lane axis of (C, NHW).
        sp = jnp.where(y > SP_THRESH, y,
                       jnp.log1p(jnp.exp(jnp.minimum(y, SP_THRESH))))
        s = jnp.sum(sp, axis=1, keepdims=True)
        ss = jnp.sum(sp * sp, axis=1, keepdims=True)
        mean = s * inv_n
        var = jnp.maximum(ss * inv_n - mean * mean, 0.0)   # clamp vs fp cancellation
        return (sp - mean) * jax.lax.rsqrt(var + BN_EPS)

    def conv(x, w_ref, layer):
        # "same" conv via per-tap accumulation on lane-dense (Cin, NHW) slabs.
        #   out[:, idx] += W[:, :, kh, kw] @ x[:, idx + dh*W + dw]   (masked at
        # row / image borders; the masks also cover roll wrap-around).
        k, d = ksizes[layer], dils[layer]
        p = (k // 2) * d
        acc = None
        for kh in range(k):
            for kw in range(k):
                dh, dw = kh * d - p, kw * d - p
                s = dh * W + dw
                xs = x if s == 0 else pltpu.roll(x, shift=(-s) % NHW, axis=1)
                m = border_mask(dh, dw)
                xt = xs if m is None else jnp.where(m, xs, 0.0)
                part = jax.lax.dot_general(
                    w_ref[kh * k + kw], xt,                 # (Cout,Cin)x(Cin,NHW)
                    dimension_numbers=(((1,), (0,)), ((), ())),
                    preferred_element_type=jnp.float32)
                acc = part if acc is None else acc + part
        return acc

    x = x_ref[...]                                          # (Cin, NHW)

    # --- first_pass: conv0 -> softplus -> BN --------------------------------
    y1 = softplus_bn(conv(x, w0_ref, 0))                    # (C0, NHW), kept in vregs

    # --- second_pass middle block: conv1 -> softplus -> BN ------------------
    mid = softplus_bn(conv(y1, w1_ref, 1))                  # (C1, NHW)

    # --- second_pass final conv + identity skip + softplus -> BN ------------
    y2 = conv(mid, w2_ref, 2)                               # (C2, NHW)
    o_ref[...] = softplus_bn(y2 + y1)


# ----------------------------------------------------------------------------
# Wrapper / glue (plain JAX): weight packing, layout plumbing.
# ----------------------------------------------------------------------------
def pack_conv_weight_taps(w_oihw):
    """OIHW conv weight -> (k*k, Cout, Cin): one small (Cout, Cin) matrix per
    tap, indexed with a static leading-axis index in-kernel (no Kmax padding,
    no lane-axis slicing)."""
    o, i, kh, kw = w_oihw.shape
    return jnp.transpose(w_oihw, (2, 3, 0, 1)).reshape(kh * kw, o, i)


def bskipadd_forward_pallas(x_nchw, ws_oihw, kernel_sizes, dilations):
    """Fused BSkipAddBlock.sampled_forward (weights already sampled).
    Input/output in PyTorch NCHW layout."""
    N, Cin, H, W = x_nchw.shape
    C0, C1, C2 = (int(w.shape[0]) for w in ws_oihw)
    assert C0 == C2, \
        "identity skip (reduce_skip=False) requires out_depths[0] == out_depths[-1]"
    NHW = N * H * W

    # lane-dense (C, N*H*W) activation layout for the kernel
    x_flat = jnp.transpose(x_nchw, (1, 0, 2, 3)).reshape(Cin, NHW)

    # per-flat-position (h, w) coordinates for the border masks
    flat = jnp.arange(NHW, dtype=jnp.int32)
    hpos = ((flat // W) % H).reshape(1, NHW)
    wpos = (flat % W).reshape(1, NHW)

    w_taps = [pack_conv_weight_taps(w) for w in ws_oihw]

    kernel = functools.partial(
        bskipadd_kernel, N=N, H=H, W=W,
        ksizes=tuple(kernel_sizes), dils=tuple(dilations))

    out_flat = pl.pallas_call(
        kernel,
        out_shape=jax.ShapeDtypeStruct((C2, NHW), jnp.float32),
        in_specs=[pl.BlockSpec(memory_space=pltpu.MemorySpace.VMEM)] * 6,
        out_specs=pl.BlockSpec(memory_space=pltpu.MemorySpace.VMEM),
    )(x_flat, hpos, wpos, *w_taps)

    # lane-dense (C2, N*H*W) kernel output -> NCHW (layout plumbing only;
    # keep (C, NHW) downstream where possible to avoid this HBM round trip).
    return jnp.transpose(out_flat.reshape(C2, N, H, W), (1, 0, 2, 3))


# ----------------------------------------------------------------------------
# Bayesian parameter init / sampling (mirrors BConv)
# ----------------------------------------------------------------------------
def init_bconv_params(key, in_c, out_c, k, var_init, dim=2):
    """Mirrors BConv.reset_parameters (PyTorch OIHW layout)."""
    stdv = 1.0 / math.sqrt(in_c * (k ** dim))
    kmu, keps = jax.random.split(key)
    mu = jax.random.uniform(kmu, (out_c, in_c, k, k), jnp.float32, -stdv, stdv)
    sigma = jnp.full((out_c, in_c, k, k), math.log(var_init), jnp.float32)
    eps = jax.random.normal(keps, (out_c, in_c, k, k), jnp.float32)
    return mu, sigma, eps


def sample_weight_and_kl(mu, sigma, eps):
    """w = mu + exp(sigma)*eps  (BConv._sample_w)."""
    sig = jnp.exp(sigma)
    w = mu + sig * eps
    # TODO(synk): `prior.kl_div` is an external object in the original module;
    # using a Monte-Carlo KL against a standard-normal prior as a stand-in.
    logq = -0.5 * math.log(2.0 * math.pi) - sigma - (w - mu) ** 2 / (2.0 * sig ** 2)
    logp = -0.5 * math.log(2.0 * math.pi) - w ** 2 / 2.0
    kl = jnp.sum(logq - logp)
    return w, kl


# ----------------------------------------------------------------------------
# Pure-JAX reference of one conv(+skip)+softplus+BN block (sanity check)
# ----------------------------------------------------------------------------
def ref_block(x_nhwc, w_oihw, skip, padding, dilation):
    w_hwio = jnp.transpose(w_oihw, (2, 3, 1, 0))
    y = jax.lax.conv_general_dilated(
        x_nhwc, w_hwio, window_strides=(1, 1),
        padding=[(padding, padding), (padding, padding)],
        rhs_dilation=(dilation, dilation),
        dimension_numbers=('NHWC', 'HWIO', 'NHWC'))
    y = y + skip
    y = jax.nn.softplus(y)
    mean = jnp.mean(y, axis=(0, 1, 2), keepdims=True)
    var = jnp.mean((y - mean) ** 2, axis=(0, 1, 2), keepdims=True)
    return (y - mean) * jax.lax.rsqrt(var + BN_EPS)


if __name__ == "__main__":
    # module config: in_depth=4, out_depths=[8,8,8], kernel_sizes=[3,3,3],
    # dilations=[1,2,1], reduce_skip=False, batch_norm=True, dim=2
    N, Cin, H, W = 2, 4, 16, 16
    out_depths = [8, 8, 8]
    kernel_sizes = [3, 3, 3]
    dilations = [1, 2, 1]
    paddings = [(k // 2) * d for k, d in zip(kernel_sizes, dilations)]
    var_init = 1e-4

    key = jax.random.PRNGKey(0)
    keys = jax.random.split(key, 4)
    x_nchw = jax.random.normal(keys[0], (N, Cin, H, W), jnp.float32)

    in_channels = [Cin, out_depths[0], out_depths[1]]
    params = [init_bconv_params(keys[i + 1], in_channels[i], out_depths[i],
                                kernel_sizes[i], var_init)
              for i in range(3)]

    # sample weights + KL (BConv._sample_w per conv, summed like BSequential)
    ws_oihw, kls = [], []
    for mu, sigma, eps in params:
        w, kl = sample_weight_and_kl(mu, sigma, eps)
        ws_oihw.append(w)
        kls.append(kl)
    kl_total = kls[0] + kls[1] + kls[2]

    out_nchw = bskipadd_forward_pallas(x_nchw, ws_oihw, kernel_sizes, dilations)
    jax.block_until_ready((out_nchw, kl_total))

    # sanity check against a pure-JAX reference (NHWC)
    x_nhwc = jnp.transpose(x_nchw, (0, 2, 3, 1))
    r1 = ref_block(x_nhwc, ws_oihw[0], 0.0, paddings[0], dilations[0])
    r2 = ref_block(r1, ws_oihw[1], 0.0, paddings[1], dilations[1])
    r3 = ref_block(r2, ws_oihw[2], r1, paddings[2], dilations[2])
    out_nhwc = jnp.transpose(out_nchw, (0, 2, 3, 1))
    assert jnp.allclose(out_nhwc, r3, atol=1e-2, rtol=1e-2), \
        "mismatch vs JAX reference"

    print("KERNEL_OK")
</pallas_src>

<mosaic_0001>
module attributes {stable_mosaic.version = 11 : i64} {
  func.func @bskipadd_kernel(%arg0: memref<4x512xf32, #tpu.memory_space<vmem>>, %arg1: memref<1x512xi32, #tpu.memory_space<vmem>>, %arg2: memref<1x512xi32, #tpu.memory_space<vmem>>, %arg3: memref<9x8x4xf32, #tpu.memory_space<vmem>>, %arg4: memref<9x8x8xf32, #tpu.memory_space<vmem>>, %arg5: memref<9x8x8xf32, #tpu.memory_space<vmem>>, %arg6: memref<8x512xf32, #tpu.memory_space<vmem>>) attributes {dimension_semantics = [], scalar_prefetch = 0 : i64, scratch_operands = 0 : i64, tpu.core_type = #tpu.core_type<tc>} {
    %c0 = arith.constant 0 : index
    %c0_0 = arith.constant 0 : index
    %0 = vector.load %arg1[%c0, %c0_0] : memref<1x512xi32, #tpu.memory_space<vmem>>, vector<1x512xi32>
    %c0_1 = arith.constant 0 : index
    %c0_2 = arith.constant 0 : index
    %1 = vector.load %arg2[%c0_1, %c0_2] : memref<1x512xi32, #tpu.memory_space<vmem>>, vector<1x512xi32>
    %c0_3 = arith.constant 0 : index
    %c0_4 = arith.constant 0 : index
    %2 = vector.load %arg0[%c0_3, %c0_4] : memref<4x512xf32, #tpu.memory_space<vmem>>, vector<4x512xf32>
    %c17_i32 = arith.constant 17 : i32
    %3 = tpu.dynamic_rotate %2 by %c17_i32 dim 1 : vector<4x512xf32>, i32 -> vector<4x512xf32>
    %c1_i32 = arith.constant 1 : i32
    %4 = vector.broadcast %c1_i32 : i32 to vector<1x512xi32>
    %5 = arith.cmpi sge, %0, %4 : vector<1x512xi32>
    %c1_i32_5 = arith.constant 1 : i32
    %6 = vector.broadcast %c1_i32_5 : i32 to vector<1x512xi32>
    %7 = arith.cmpi sge, %1, %6 : vector<1x512xi32>
    %8 = arith.andi %5, %7 : vector<1x512xi1>
    %cst = arith.constant 0.000000e+00 : f32
    %9 = vector.shape_cast %8 : vector<1x512xi1> to vector<1x512xi1>
    %10 = vector.broadcast %9 : vector<1x512xi1> to vector<4x512xi1>
    %11 = vector.broadcast %cst : f32 to vector<4x512xf32>
    %12 = arith.select %10, %3, %11 : vector<4x512xi1>, vector<4x512xf32>
    %c0_6 = arith.constant 0 : index
    %c0_7 = arith.constant 0 : index
    %c0_8 = arith.constant 0 : index
    %13 = vector.load %arg3[%c0_6, %c0_7, %c0_8] : memref<9x8x4xf32, #tpu.memory_space<vmem>>, vector<1x8x4xf32>
    %14 = vector.shape_cast %13 : vector<1x8x4xf32> to vector<8x4xf32>
    %cst_9 = arith.constant dense<0.000000e+00> : vector<8x512xf32>
    %15 = tpu.matmul %14, %12, %cst_9 {dimension_numbers = #tpu.dot_dimension_numbers<[1], [0], [0], [1], [0, 0, 1, 1], [], []>} : vector<8x4xf32>, vector<4x512xf32>, vector<8x512xf32> -> vector<8x512xf32>
    %c16_i32 = arith.constant 16 : i32
    %16 = tpu.dynamic_rotate %2 by %c16_i32 dim 1 : vector<4x512xf32>, i32 -> vector<4x512xf32>
    %c1_i32_10 = arith.constant 1 : i32
    %17 = vector.broadcast %c1_i32_10 : i32 to vector<1x512xi32>
    %18 = arith.cmpi sge, %0, %17 : vector<1x512xi32>
    %cst_11 = arith.constant 0.000000e+00 : f32
    %19 = vector.shape_cast %18 : vector<1x512xi1> to vector<1x512xi1>
    %20 = vector.broadcast %19 : vector<1x512xi1> to vector<4x512xi1>
    %21 = vector.broadcast %cst_11 : f32 to vector<4x512xf32>
    %22 = arith.select %20, %16, %21 : vector<4x512xi1>, vector<4x512xf32>
    %c1 = arith.constant 1 : index
    %c0_12 = arith.constant 0 : index
    %c0_13 = arith.constant 0 : index
    %23 = vector.load %arg3[%c1, %c0_12, %c0_13] : memref<9x8x4xf32, #tpu.memory_space<vmem>>, vector<1x8x4xf32>
    %24 = vector.shape_cast %23 : vector<1x8x4xf32> to vector<8x4xf32>
    %cst_14 = arith.constant dense<0.000000e+00> : vector<8x512xf32>
    %25 = tpu.matmul %24, %22, %cst_14 {dimension_numbers = #tpu.dot_dimension_numbers<[1], [0], [0], [1], [0, 0, 1, 1], [], []>} : vector<8x4xf32>, vector<4x512xf32>, vector<8x512xf32> -> vector<8x512xf32>
    %26 = arith.addf %15, %25 : vector<8x512xf32>
    %c15_i32 = arith.constant 15 : i32
    %27 = tpu.dynamic_rotate %2 by %c15_i32 dim 1 : vector<4x512xf32>, i32 -> vector<4x512xf32>
    %c1_i32_15 = arith.constant 1 : i32
    %28 = vector.broadcast %c1_i32_15 : i32 to vector<1x512xi32>
    %29 = arith.cmpi sge, %0, %28 : vector<1x512xi32>
    %c15_i32_16 = arith.constant 15 : i32
    %30 = vector.broadcast %c15_i32_16 : i32 to vector<1x512xi32>
    %31 = arith.cmpi slt, %1, %30 : vector<1x512xi32>
    %32 = arith.andi %29, %31 : vector<1x512xi1>
    %cst_17 = arith.constant 0.000000e+00 : f32
    %33 = vector.shape_cast %32 : vector<1x512xi1> to vector<1x512xi1>
    %34 = vector.broadcast %33 : vector<1x512xi1> to vector<4x512xi1>
    %35 = vector.broadcast %cst_17 : f32 to vector<4x512xf32>
    %36 = arith.select %34, %27, %35 : vector<4x512xi1>, vector<4x512xf32>
    %c2 = arith.constant 2 : index
    %c0_18 = arith.constant 0 : index
    %c0_19 = arith.constant 0 : index
    %37 = vector.load %arg3[%c2, %c0_18, %c0_19] : memref<9x8x4xf32, #tpu.memory_space<vmem>>, vector<1x8x4xf32>
    %38 = vector.shape_cast %37 : vector<1x8x4xf32> to vector<8x4xf32>
    %cst_20 = arith.constant dense<0.000000e+00> : vector<8x512xf32>
    %39 = tpu.matmul %38, %36, %cst_20 {dimension_numbers = #tpu.dot_dimension_numbers<[1], [0], [0], [1], [0, 0, 1, 1], [], []>} : vector<8x4xf32>, vector<4x512xf32>, vector<8x512xf32> -> vector<8x512xf32>
    %40 = arith.addf %26, %39 : vector<8x512xf32>
    %c1_i32_21 = arith.constant 1 : i32
    %41 = tpu.dynamic_rotate %2 by %c1_i32_21 dim 1 : vector<4x512xf32>, i32 -> vector<4x512xf32>
    %c1_i32_22 = arith.constant 1 : i32
    %42 = vector.broadcast %c1_i32_22 : i32 to vector<1x512xi32>
    %43 = arith.cmpi sge, %1, %42 : vector<1x512xi32>
    %cst_23 = arith.constant 0.000000e+00 : f32
    %44 = vector.shape_cast %43 : vector<1x512xi1> to vector<1x512xi1>
    %45 = vector.broadcast %44 : vector<1x512xi1> to vector<4x512xi1>
    %46 = vector.broadcast %cst_23 : f32 to vector<4x512xf32>
    %47 = arith.select %45, %41, %46 : vector<4x512xi1>, vector<4x512xf32>
    %c3 = arith.constant 3 : index
    %c0_24 = arith.constant 0 : index
    %c0_25 = arith.constant 0 : index
    %48 = vector.load %arg3[%c3, %c0_24, %c0_25] : memref<9x8x4xf32, #tpu.memory_space<vmem>>, vector<1x8x4xf32>
    %49 = vector.shape_cast %48 : vector<1x8x4xf32> to vector<8x4xf32>
    %cst_26 = arith.constant dense<0.000000e+00> : vector<8x512xf32>
    %50 = tpu.matmul %49, %47, %cst_26 {dimension_numbers = #tpu.dot_dimension_numbers<[1], [0], [0], [1], [0, 0, 1, 1], [], []>} : vector<8x4xf32>, vector<4x512xf32>, vector<8x512xf32> -> vector<8x512xf32>
    %51 = arith.addf %40, %50 : vector<8x512xf32>
    %c4 = arith.constant 4 : index
    %c0_27 = arith.constant 0 : index
    %c0_28 = arith.constant 0 : index
    %52 = vector.load %arg3[%c4, %c0_27, %c0_28] : memref<9x8x4xf32, #tpu.memory_space<vmem>>, vector<1x8x4xf32>
    %53 = vector.shape_cast %52 : vector<1x8x4xf32> to vector<8x4xf32>
    %cst_29 = arith.constant dense<0.000000e+00> : vector<8x512xf32>
    %54 = tpu.matmul %53, %2, %cst_29 {dimension_numbers = #tpu.dot_dimension_numbers<[1], [0], [0], [1], [0, 0, 1, 1], [], []>} : vector<8x4xf32>, vector<4x512xf32>, vector<8x512xf32> -> vector<8x512xf32>
    %55 = arith.addf %51, %54 : vector<8x512xf32>
    %c511_i32 = arith.constant 511 : i32
    %56 = tpu.dynamic_rotate %2 by %c511_i32 dim 1 : vector<4x512xf32>, i32 -> vector<4x512xf32>
    %c15_i32_30 = arith.constant 15 : i32
    %57 = vector.broadcast %c15_i32_30 : i32 to vector<1x512xi32>
    %58 = arith.cmpi slt, %1, %57 : vector<1x512xi32>
    %cst_31 = arith.constant 0.000000e+00 : f32
    %59 = vector.shape_cast %58 : vector<1x512xi1> to vector<1x512xi1>
    %60 = vector.broadcast %59 : vector<1x512xi1> to vector<4x512xi1>
    %61 = vector.broadcast %cst_31 : f32 to vector<4x512xf32>
    %62 = arith.select %60, %56, %61 : vector<4x512xi1>, vector<4x512xf32>
    %c5 = arith.constant 5 : index
    %c0_32 = arith.constant 0 : index
    %c0_33 = arith.constant 0 : index
    %63 = vector.load %arg3[%c5, %c0_32, %c0_33] : memref<9x8x4xf32, #tpu.memory_space<vmem>>, vector<1x8x4xf32>
    %64 = vector.shape_cast %63 : vector<1x8x4xf32> to vector<8x4xf32>
    %cst_34 = arith.constant dense<0.000000e+00> : vector<8x512xf32>
    %65 = tpu.matmul %64, %62, %cst_34 {dimension_numbers = #tpu.dot_dimension_numbers<[1], [0], [0], [1], [0, 0, 1, 1], [], []>} : vector<8x4xf32>, vector<4x512xf32>, vector<8x512xf32> -> vector<8x512xf32>
    %66 = arith.addf %55, %65 : vector<8x512xf32>
    %c497_i32 = arith.constant 497 : i32
    %67 = tpu.dynamic_rotate %2 by %c497_i32 dim 1 : vector<4x512xf32>, i32 -> vector<4x512xf32>
    %c15_i32_35 = arith.constant 15 : i32
    %68 = vector.broadcast %c15_i32_35 : i32 to vector<1x512xi32>
    %69 = arith.cmpi slt, %0, %68 : vector<1x512xi32>
    %c1_i32_36 = arith.constant 1 : i32
    %70 = vector.broadcast %c1_i32_36 : i32 to vector<1x512xi32>
    %71 = arith.cmpi sge, %1, %70 : vector<1x512xi32>
    %72 = arith.andi %69, %71 : vector<1x512xi1>
    %cst_37 = arith.constant 0.000000e+00 : f32
    %73 = vector.shape_cast %72 : vector<1x512xi1> to vector<1x512xi1>
    %74 = vector.broadcast %73 : vector<1x512xi1> to vector<4x512xi1>
    %75 = vector.broadcast %cst_37 : f32 to vector<4x512xf32>
    %76 = arith.select %74, %67, %75 : vector<4x512xi1>, vector<4x512xf32>
    %c6 = arith.constant 6 : index
    %c0_38 = arith.constant 0 : index
    %c0_39 = arith.constant 0 : index
    %77 = vector.load %arg3[%c6, %c0_38, %c0_39] : memref<9x8x4xf32, #tpu.memory_space<vmem>>, vector<1x8x4xf32>
    %78 = vector.shape_cast %77 : vector<1x8x4xf32> to vector<8x4xf32>
    %cst_40 = arith.constant dense<0.000000e+00> : vector<8x512xf32>
    %79 = tpu.matmul %78, %76, %cst_40 {dimension_numbers = #tpu.dot_dimension_numbers<[1], [0], [0], [1], [0, 0, 1, 1], [], []>} : vector<8x4xf32>, vector<4x512xf32>, vector<8x512xf32> -> vector<8x512xf32>
    %80 = arith.addf %66, %79 : vector<8x512xf32>
    %c496_i32 = arith.constant 496 : i32
    %81 = tpu.dynamic_rotate %2 by %c496_i32 dim 1 : vector<4x512xf32>, i32 -> vector<4x512xf32>
    %c15_i32_41 = arith.constant 15 : i32
    %82 = vector.broadcast %c15_i32_41 : i32 to vector<1x512xi32>
    %83 = arith.cmpi slt, %0, %82 : vector<1x512xi32>
    %cst_42 = arith.constant 0.000000e+00 : f32
    %84 = vector.shape_cast %83 : vector<1x512xi1> to vector<1x512xi1>
    %85 = vector.broadcast %84 : vector<1x512xi1> to vector<4x512xi1>
    %86 = vector.broadcast %cst_42 : f32 to vector<4x512xf32>
    %87 = arith.select %85, %81, %86 : vector<4x512xi1>, vector<4x512xf32>
    %c7 = arith.constant 7 : index
    %c0_43 = arith.constant 0 : index
    %c0_44 = arith.constant 0 : index
    %88 = vector.load %arg3[%c7, %c0_43, %c0_44] : memref<9x8x4xf32, #tpu.memory_space<vmem>>, vector<1x8x4xf32>
    %89 = vector.shape_cast %88 : vector<1x8x4xf32> to vector<8x4xf32>
    %cst_45 = arith.constant dense<0.000000e+00> : vector<8x512xf32>
    %90 = tpu.matmul %89, %87, %cst_45 {dimension_numbers = #tpu.dot_dimension_numbers<[1], [0], [0], [1], [0, 0, 1, 1], [], []>} : vector<8x4xf32>, vector<4x512xf32>, vector<8x512xf32> -> vector<8x512xf32>
    %91 = arith.addf %80, %90 : vector<8x512xf32>
    %c495_i32 = arith.constant 495 : i32
    %92 = tpu.dynamic_rotate %2 by %c495_i32 dim 1 : vector<4x512xf32>, i32 -> vector<4x512xf32>
    %c15_i32_46 = arith.constant 15 : i32
    %93 = vector.broadcast %c15_i32_46 : i32 to vector<1x512xi32>
    %94 = arith.cmpi slt, %0, %93 : vector<1x512xi32>
    %c15_i32_47 = arith.constant 15 : i32
    %95 = vector.broadcast %c15_i32_47 : i32 to vector<1x512xi32>
    %96 = arith.cmpi slt, %1, %95 : vector<1x512xi32>
    %97 = arith.andi %94, %96 : vector<1x512xi1>
    %cst_48 = arith.constant 0.000000e+00 : f32
    %98 = vector.shape_cast %97 : vector<1x512xi1> to vector<1x512xi1>
    %99 = vector.broadcast %98 : vector<1x512xi1> to vector<4x512xi1>
    %100 = vector.broadcast %cst_48 : f32 to vector<4x512xf32>
    %101 = arith.select %99, %92, %100 : vector<4x512xi1>, vector<4x512xf32>
    %c8 = arith.constant 8 : index
    %c0_49 = arith.constant 0 : index
    %c0_50 = arith.constant 0 : index
    %102 = vector.load %arg3[%c8, %c0_49, %c0_50] : memref<9x8x4xf32, #tpu.memory_space<vmem>>, vector<1x8x4xf32>
    %103 = vector.shape_cast %102 : vector<1x8x4xf32> to vector<8x4xf32>
    %cst_51 = arith.constant dense<0.000000e+00> : vector<8x512xf32>
    %104 = tpu.matmul %103, %101, %cst_51 {dimension_numbers = #tpu.dot_dimension_numbers<[1], [0], [0], [1], [0, 0, 1, 1], [], []>} : vector<8x4xf32>, vector<4x512xf32>, vector<8x512xf32> -> vector<8x512xf32>
    %105 = arith.addf %91, %104 : vector<8x512xf32>
    %cst_52 = arith.constant 2.000000e+01 : f32
    %106 = vector.broadcast %cst_52 : f32 to vector<8x512xf32>
    %107 = arith.cmpf ogt, %105, %106 : vector<8x512xf32>
    %cst_53 = arith.constant 2.000000e+01 : f32
    %108 = vector.broadcast %cst_53 : f32 to vector<8x512xf32>
    %109 = arith.minimumf %105, %108 : vector<8x512xf32>
    %110 = math.exp %109 : vector<8x512xf32>
    %111 = math.log1p %110 : vector<8x512xf32>
    %112 = arith.select %107, %105, %111 : vector<8x512xi1>, vector<8x512xf32>
    %cst_54 = arith.constant dense<0.000000e+00> : vector<8xf32>
    %113 = vector.multi_reduction <add>, %112, %cst_54 [1] : vector<8x512xf32> to vector<8xf32>
    %114 = vector.shape_cast %113 : vector<8xf32> to vector<8x1xf32>
    %115 = arith.mulf %112, %112 : vector<8x512xf32>
    %cst_55 = arith.constant dense<0.000000e+00> : vector<8xf32>
    %116 = vector.multi_reduction <add>, %115, %cst_55 [1] : vector<8x512xf32> to vector<8xf32>
    %117 = vector.shape_cast %116 : vector<8xf32> to vector<8x1xf32>
    %cst_56 = arith.constant 0.001953125 : f32
    %118 = vector.broadcast %cst_56 : f32 to vector<8x1xf32>
    %119 = arith.mulf %114, %118 : vector<8x1xf32>
    %cst_57 = arith.constant 0.001953125 : f32
    %120 = vector.broadcast %cst_57 : f32 to vector<8x1xf32>
    %121 = arith.mulf %117, %120 : vector<8x1xf32>
    %122 = arith.mulf %119, %119 : vector<8x1xf32>
    %123 = arith.subf %121, %122 : vector<8x1xf32>
    %cst_58 = arith.constant 0.000000e+00 : f32
    %124 = vector.broadcast %cst_58 : f32 to vector<8x1xf32>
    %125 = arith.maximumf %123, %124 : vector<8x1xf32>
    %126 = vector.broadcast %119 : vector<8x1xf32> to vector<8x512xf32>
    %127 = arith.subf %112, %126 : vector<8x512xf32>
    %cst_59 = arith.constant 9.99999974E-6 : f32
    %128 = vector.broadcast %cst_59 : f32 to vector<8x1xf32>
    %129 = arith.addf %125, %128 : vector<8x1xf32>
    %130 = math.rsqrt %129 : vector<8x1xf32>
    %131 = vector.broadcast %130 : vector<8x1xf32> to vector<8x512xf32>
    %132 = arith.mulf %127, %131 : vector<8x512xf32>
    %c34_i32 = arith.constant 34 : i32
    %133 = tpu.dynamic_rotate %132 by %c34_i32 dim 1 : vector<8x512xf32>, i32 -> vector<8x512xf32>
    %c2_i32 = arith.constant 2 : i32
    %134 = vector.broadcast %c2_i32 : i32 to vector<1x512xi32>
    %135 = arith.cmpi sge, %0, %134 : vector<1x512xi32>
    %c2_i32_60 = arith.constant 2 : i32
    %136 = vector.broadcast %c2_i32_60 : i32 to vector<1x512xi32>
    %137 = arith.cmpi sge, %1, %136 : vector<1x512xi32>
    %138 = arith.andi %135, %137 : vector<1x512xi1>
    %cst_61 = arith.constant 0.000000e+00 : f32
    %139 = vector.shape_cast %138 : vector<1x512xi1> to vector<1x512xi1>
    %140 = vector.broadcast %139 : vector<1x512xi1> to vector<8x512xi1>
    %141 = vector.broadcast %cst_61 : f32 to vector<8x512xf32>
    %142 = arith.select %140, %133, %141 : vector<8x512xi1>, vector<8x512xf32>
    %c0_62 = arith.constant 0 : index
    %c0_63 = arith.constant 0 : index
    %c0_64 = arith.constant 0 : index
    %143 = vector.load %arg4[%c0_62, %c0_63, %c0_64] : memref<9x8x8xf32, #tpu.memory_space<vmem>>, vector<1x8x8xf32>
    %144 = vector.shape_cast %143 : vector<1x8x8xf32> to vector<8x8xf32>
    %cst_65 = arith.constant dense<0.000000e+00> : vector<8x512xf32>
    %145 = tpu.matmul %144, %142, %cst_65 {dimension_numbers = #tpu.dot_dimension_numbers<[1], [0], [0], [1], [0, 0, 1, 1], [], []>} : vector<8x8xf32>, vector<8x512xf32>, vector<8x512xf32> -> vector<8x512xf32>
    %c32_i32 = arith.constant 32 : i32
    %146 = tpu.dynamic_rotate %132 by %c32_i32 dim 1 : vector<8x512xf32>, i32 -> vector<8x512xf32>
    %c2_i32_66 = arith.constant 2 : i32
    %147 = vector.broadcast %c2_i32_66 : i32 to vector<1x512xi32>
    %148 = arith.cmpi sge, %0, %147 : vector<1x512xi32>
    %cst_67 = arith.constant 0.000000e+00 : f32
    %149 = vector.shape_cast %148 : vector<1x512xi1> to vector<1x512xi1>
    %150 = vector.broadcast %149 : vector<1x512xi1> to vector<8x512xi1>
    %151 = vector.broadcast %cst_67 : f32 to vector<8x512xf32>
    %152 = arith.select %150, %146, %151 : vector<8x512xi1>, vector<8x512xf32>
    %c1_68 = arith.constant 1 : index
    %c0_69 = arith.constant 0 : index
    %c0_70 = arith.constant 0 : index
    %153 = vector.load %arg4[%c1_68, %c0_69, %c0_70] : memref<9x8x8xf32, #tpu.memory_space<vmem>>, vector<1x8x8xf32>
    %154 = vector.shape_cast %153 : vector<1x8x8xf32> to vector<8x8xf32>
    %cst_71 = arith.constant dense<0.000000e+00> : vector<8x512xf32>
    %155 = tpu.matmul %154, %152, %cst_71 {dimension_numbers = #tpu.dot_dimension_numbers<[1], [0], [0], [1], [0, 0, 1, 1], [], []>} : vector<8x8xf32>, vector<8x512xf32>, vector<8x512xf32> -> vector<8x512xf32>
    %156 = arith.addf %145, %155 : vector<8x512xf32>
    %c30_i32 = arith.constant 30 : i32
    %157 = tpu.dynamic_rotate %132 by %c30_i32 dim 1 : vector<8x512xf32>, i32 -> vector<8x512xf32>
    %c2_i32_72 = arith.constant 2 : i32
    %158 = vector.broadcast %c2_i32_72 : i32 to vector<1x512xi32>
    %159 = arith.cmpi sge, %0, %158 : vector<1x512xi32>
    %c14_i32 = arith.constant 14 : i32
    %160 = vector.broadcast %c14_i32 : i32 to vector<1x512xi32>
    %161 = arith.cmpi slt, %1, %160 : vector<1x512xi32>
    %162 = arith.andi %159, %161 : vector<1x512xi1>
    %cst_73 = arith.constant 0.000000e+00 : f32
    %163 = vector.shape_cast %162 : vector<1x512xi1> to vector<1x512xi1>
    %164 = vector.broadcast %163 : vector<1x512xi1> to vector<8x512xi1>
    %165 = vector.broadcast %cst_73 : f32 to vector<8x512xf32>
    %166 = arith.select %164, %157, %165 : vector<8x512xi1>, vector<8x512xf32>
    %c2_74 = arith.constant 2 : index
    %c0_75 = arith.constant 0 : index
    %c0_76 = arith.constant 0 : index
    %167 = vector.load %arg4[%c2_74, %c0_75, %c0_76] : memref<9x8x8xf32, #tpu.memory_space<vmem>>, vector<1x8x8xf32>
    %168 = vector.shape_cast %167 : vector<1x8x8xf32> to vector<8x8xf32>
    %cst_77 = arith.constant dense<0.000000e+00> : vector<8x512xf32>
    %169 = tpu.matmul %168, %166, %cst_77 {dimension_numbers = #tpu.dot_dimension_numbers<[1], [0], [0], [1], [0, 0, 1, 1], [], []>} : vector<8x8xf32>, vector<8x512xf32>, vector<8x512xf32> -> vector<8x512xf32>
    %170 = arith.addf %156, %169 : vector<8x512xf32>
    %c2_i32_78 = arith.constant 2 : i32
    %171 = tpu.dynamic_rotate %132 by %c2_i32_78 dim 1 : vector<8x512xf32>, i32 -> vector<8x512xf32>
    %c2_i32_79 = arith.constant 2 : i32
    %172 = vector.broadcast %c2_i32_79 : i32 to vector<1x512xi32>
    %173 = arith.cmpi sge, %1, %172 : vector<1x512xi32>
    %cst_80 = arith.constant 0.000000e+00 : f32
    %174 = vector.shape_cast %173 : vector<1x512xi1> to vector<1x512xi1>
    %175 = vector.broadcast %174 : vector<1x512xi1> to vector<8x512xi1>
    %176 = vector.broadcast %cst_80 : f32 to vector<8x512xf32>
    %177 = arith.select %175, %171, %176 : vector<8x512xi1>, vector<8x512xf32>
    %c3_81 = arith.constant 3 : index
    %c0_82 = arith.constant 0 : index
    %c0_83 = arith.constant 0 : index
    %178 = vector.load %arg4[%c3_81, %c0_82, %c0_83] : memref<9x8x8xf32, #tpu.memory_space<vmem>>, vector<1x8x8xf32>
    %179 = vector.shape_cast %178 : vector<1x8x8xf32> to vector<8x8xf32>
    %cst_84 = arith.constant dense<0.000000e+00> : vector<8x512xf32>
    %180 = tpu.matmul %179, %177, %cst_84 {dimension_numbers = #tpu.dot_dimension_numbers<[1], [0], [0], [1], [0, 0, 1, 1], [], []>} : vector<8x8xf32>, vector<8x512xf32>, vector<8x512xf32> -> vector<8x512xf32>
    %181 = arith.addf %170, %180 : vector<8x512xf32>
    %c4_85 = arith.constant 4 : index
    %c0_86 = arith.constant 0 : index
    %c0_87 = arith.constant 0 : index
    %182 = vector.load %arg4[%c4_85, %c0_86, %c0_87] : memref<9x8x8xf32, #tpu.memory_space<vmem>>, vector<1x8x8xf32>
    %183 = vector.shape_cast %182 : vector<1x8x8xf32> to vector<8x8xf32>
    %cst_88 = arith.constant dense<0.000000e+00> : vector<8x512xf32>
    %184 = tpu.matmul %183, %132, %cst_88 {dimension_numbers = #tpu.dot_dimension_numbers<[1], [0], [0], [1], [0, 0, 1, 1], [], []>} : vector<8x8xf32>, vector<8x512xf32>, vector<8x512xf32> -> vector<8x512xf32>
    %185 = arith.addf %181, %184 : vector<8x512xf32>
    %c510_i32 = arith.constant 510 : i32
    %186 = tpu.dynamic_rotate %132 by %c510_i32 dim 1 : vector<8x512xf32>, i32 -> vector<8x512xf32>
    %c14_i32_89 = arith.constant 14 : i32
    %187 = vector.broadcast %c14_i32_89 : i32 to vector<1x512xi32>
    %188 = arith.cmpi slt, %1, %187 : vector<1x512xi32>
    %cst_90 = arith.constant 0.000000e+00 : f32
    %189 = vector.shape_cast %188 : vector<1x512xi1> to vector<1x512xi1>
    %190 = vector.broadcast %189 : vector<1x512xi1> to vector<8x512xi1>
    %191 = vector.broadcast %cst_90 : f32 to vector<8x512xf32>
    %192 = arith.select %190, %186, %191 : vector<8x512xi1>, vector<8x512xf32>
    %c5_91 = arith.constant 5 : index
    %c0_92 = arith.constant 0 : index
    %c0_93 = arith.constant 0 : index
    %193 = vector.load %arg4[%c5_91, %c0_92, %c0_93] : memref<9x8x8xf32, #tpu.memory_space<vmem>>, vector<1x8x8xf32>
    %194 = vector.shape_cast %193 : vector<1x8x8xf32> to vector<8x8xf32>
    %cst_94 = arith.constant dense<0.000000e+00> : vector<8x512xf32>
    %195 = tpu.matmul %194, %192, %cst_94 {dimension_numbers = #tpu.dot_dimension_numbers<[1], [0], [0], [1], [0, 0, 1, 1], [], []>} : vector<8x8xf32>, vector<8x512xf32>, vector<8x512xf32> -> vector<8x512xf32>
    %196 = arith.addf %185, %195 : vector<8x512xf32>
    %c482_i32 = arith.constant 482 : i32
    %197 = tpu.dynamic_rotate %132 by %c482_i32 dim 1 : vector<8x512xf32>, i32 -> vector<8x512xf32>
    %c14_i32_95 = arith.constant 14 : i32
    %198 = vector.broadcast %c14_i32_95 : i32 to vector<1x512xi32>
    %199 = arith.cmpi slt, %0, %198 : vector<1x512xi32>
    %c2_i32_96 = arith.constant 2 : i32
    %200 = vector.broadcast %c2_i32_96 : i32 to vector<1x512xi32>
    %201 = arith.cmpi sge, %1, %200 : vector<1x512xi32>
    %202 = arith.andi %199, %201 : vector<1x512xi1>
    %cst_97 = arith.constant 0.000000e+00 : f32
    %203 = vector.shape_cast %202 : vector<1x512xi1> to vector<1x512xi1>
    %204 = vector.broadcast %203 : vector<1x512xi1> to vector<8x512xi1>
    %205 = vector.broadcast %cst_97 : f32 to vector<8x512xf32>
    %206 = arith.select %204, %197, %205 : vector<8x512xi1>, vector<8x512xf32>
    %c6_98 = arith.constant 6 : index
    %c0_99 = arith.constant 0 : index
    %c0_100 = arith.constant 0 : index
    %207 = vector.load %arg4[%c6_98, %c0_99, %c0_100] : memref<9x8x8xf32, #tpu.memory_space<vmem>>, vector<1x8x8xf32>
    %208 = vector.shape_cast %207 : vector<1x8x8xf32> to vector<8x8xf32>
    %cst_101 = arith.constant dense<0.000000e+00> : vector<8x512xf32>
    %209 = tpu.matmul %208, %206, %cst_101 {dimension_numbers = #tpu.dot_dimension_numbers<[1], [0], [0], [1], [0, 0, 1, 1], [], []>} : vector<8x8xf32>, vector<8x512xf32>, vector<8x512xf32> -> vector<8x512xf32>
    %210 = arith.addf %196, %209 : vector<8x512xf32>
    %c480_i32 = arith.constant 480 : i32
    %211 = tpu.dynamic_rotate %132 by %c480_i32 dim 1 : vector<8x512xf32>, i32 -> vector<8x512xf32>
    %c14_i32_102 = arith.constant 14 : i32
    %212 = vector.broadcast %c14_i32_102 : i32 to vector<1x512xi32>
    %213 = arith.cmpi slt, %0, %212 : vector<1x512xi32>
    %cst_103 = arith.constant 0.000000e+00 : f32
    %214 = vector.shape_cast %213 : vector<1x512xi1> to vector<1x512xi1>
    %215 = vector.broadcast %214 : vector<1x512xi1> to vector<8x512xi1>
    %216 = vector.broadcast %cst_103 : f32 to vector<8x512xf32>
    %217 = arith.select %215, %211, %216 : vector<8x512xi1>, vector<8x512xf32>
    %c7_104 = arith.constant 7 : index
    %c0_105 = arith.constant 0 : index
    %c0_106 = arith.constant 0 : index
    %218 = vector.load %arg4[%c7_104, %c0_105, %c0_106] : memref<9x8x8xf32, #tpu.memory_space<vmem>>, vector<1x8x8xf32>
    %219 = vector.shape_cast %218 : vector<1x8x8xf32> to vector<8x8xf32>
    %cst_107 = arith.constant dense<0.000000e+00> : vector<8x512xf32>
    %220 = tpu.matmul %219, %217, %cst_107 {dimension_numbers = #tpu.dot_dimension_numbers<[1], [0], [0], [1], [0, 0, 1, 1], [], []>} : vector<8x8xf32>, vector<8x512xf32>, vector<8x512xf32> -> vector<8x512xf32>
    %221 = arith.addf %210, %220 : vector<8x512xf32>
    %c478_i32 = arith.constant 478 : i32
    %222 = tpu.dynamic_rotate %132 by %c478_i32 dim 1 : vector<8x512xf32>, i32 -> vector<8x512xf32>
    %c14_i32_108 = arith.constant 14 : i32
    %223 = vector.broadcast %c14_i32_108 : i32 to vector<1x512xi32>
    %224 = arith.cmpi slt, %0, %223 : vector<1x512xi32>
    %c14_i32_109 = arith.constant 14 : i32
    %225 = vector.broadcast %c14_i32_109 : i32 to vector<1x512xi32>
    %226 = arith.cmpi slt, %1, %225 : vector<1x512xi32>
    %227 = arith.andi %224, %226 : vector<1x512xi1>
    %cst_110 = arith.constant 0.000000e+00 : f32
    %228 = vector.shape_cast %227 : vector<1x512xi1> to vector<1x512xi1>
    %229 = vector.broadcast %228 : vector<1x512xi1> to vector<8x512xi1>
    %230 = vector.broadcast %cst_110 : f32 to vector<8x512xf32>
    %231 = arith.select %229, %222, %230 : vector<8x512xi1>, vector<8x512xf32>
    %c8_111 = arith.constant 8 : index
    %c0_112 = arith.constant 0 : index
    %c0_113 = arith.constant 0 : index
    %232 = vector.load %arg4[%c8_111, %c0_112, %c0_113] : memref<9x8x8xf32, #tpu.memory_space<vmem>>, vector<1x8x8xf32>
    %233 = vector.shape_cast %232 : vector<1x8x8xf32> to vector<8x8xf32>
    %cst_114 = arith.constant dense<0.000000e+00> : vector<8x512xf32>
    %234 = tpu.matmul %233, %231, %cst_114 {dimension_numbers = #tpu.dot_dimension_numbers<[1], [0], [0], [1], [0, 0, 1, 1], [], []>} : vector<8x8xf32>, vector<8x512xf32>, vector<8x512xf32> -> vector<8x512xf32>
    %235 = arith.addf %221, %234 : vector<8x512xf32>
    %cst_115 = arith.constant 2.000000e+01 : f32
    %236 = vector.broadcast %cst_115 : f32 to vector<8x512xf32>
    %237 = arith.cmpf ogt, %235, %236 : vector<8x512xf32>
    %cst_116 = arith.constant 2.000000e+01 : f32
    %238 = vector.broadcast %cst_116 : f32 to vector<8x512xf32>
    %239 = arith.minimumf %235, %238 : vector<8x512xf32>
    %240 = math.exp %239 : vector<8x512xf32>
    %241 = math.log1p %240 : vector<8x512xf32>
    %242 = arith.select %237, %235, %241 : vector<8x512xi1>, vector<8x512xf32>
    %cst_117 = arith.constant dense<0.000000e+00> : vector<8xf32>
    %243 = vector.multi_reduction <add>, %242, %cst_117 [1] : vector<8x512xf32> to vector<8xf32>
    %244 = vector.shape_cast %243 : vector<8xf32> to vector<8x1xf32>
    %245 = arith.mulf %242, %242 : vector<8x512xf32>
    %cst_118 = arith.constant dense<0.000000e+00> : vector<8xf32>
    %246 = vector.multi_reduction <add>, %245, %cst_118 [1] : vector<8x512xf32> to vector<8xf32>
    %247 = vector.shape_cast %246 : vector<8xf32> to vector<8x1xf32>
    %cst_119 = arith.constant 0.001953125 : f32
    %248 = vector.broadcast %cst_119 : f32 to vector<8x1xf32>
    %249 = arith.mulf %244, %248 : vector<8x1xf32>
    %cst_120 = arith.constant 0.001953125 : f32
    %250 = vector.broadcast %cst_120 : f32 to vector<8x1xf32>
    %251 = arith.mulf %247, %250 : vector<8x1xf32>
    %252 = arith.mulf %249, %249 : vector<8x1xf32>
    %253 = arith.subf %251, %252 : vector<8x1xf32>
    %cst_121 = arith.constant 0.000000e+00 : f32
    %254 = vector.broadcast %cst_121 : f32 to vector<8x1xf32>
    %255 = arith.maximumf %253, %254 : vector<8x1xf32>
    %256 = vector.broadcast %249 : vector<8x1xf32> to vector<8x512xf32>
    %257 = arith.subf %242, %256 : vector<8x512xf32>
    %cst_122 = arith.constant 9.99999974E-6 : f32
    %258 = vector.broadcast %cst_122 : f32 to vector<8x1xf32>
    %259 = arith.addf %255, %258 : vector<8x1xf32>
    %260 = math.rsqrt %259 : vector<8x1xf32>
    %261 = vector.broadcast %260 : vector<8x1xf32> to vector<8x512xf32>
    %262 = arith.mulf %257, %261 : vector<8x512xf32>
    %c17_i32_123 = arith.constant 17 : i32
    %263 = tpu.dynamic_rotate %262 by %c17_i32_123 dim 1 : vector<8x512xf32>, i32 -> vector<8x512xf32>
    %cst_124 = arith.constant 0.000000e+00 : f32
    %264 = vector.shape_cast %8 : vector<1x512xi1> to vector<1x512xi1>
    %265 = vector.broadcast %264 : vector<1x512xi1> to vector<8x512xi1>
    %266 = vector.broadcast %cst_124 : f32 to vector<8x512xf32>
    %267 = arith.select %265, %263, %266 : vector<8x512xi1>, vector<8x512xf32>
    %c0_125 = arith.constant 0 : index
    %c0_126 = arith.constant 0 : index
    %c0_127 = arith.constant 0 : index
    %268 = vector.load %arg5[%c0_125, %c0_126, %c0_127] : memref<9x8x8xf32, #tpu.memory_space<vmem>>, vector<1x8x8xf32>
    %269 = vector.shape_cast %268 : vector<1x8x8xf32> to vector<8x8xf32>
    %cst_128 = arith.constant dense<0.000000e+00> : vector<8x512xf32>
    %270 = tpu.matmul %269, %267, %cst_128 {dimension_numbers = #tpu.dot_dimension_numbers<[1], [0], [0], [1], [0, 0, 1, 1], [], []>} : vector<8x8xf32>, vector<8x512xf32>, vector<8x512xf32> -> vector<8x512xf32>
    %c16_i32_129 = arith.constant 16 : i32
    %271 = tpu.dynamic_rotate %262 by %c16_i32_129 dim 1 : vector<8x512xf32>, i32 -> vector<8x512xf32>
    %cst_130 = arith.constant 0.000000e+00 : f32
    %272 = vector.shape_cast %18 : vector<1x512xi1> to vector<1x512xi1>
    %273 = vector.broadcast %272 : vector<1x512xi1> to vector<8x512xi1>
    %274 = vector.broadcast %cst_130 : f32 to vector<8x512xf32>
    %275 = arith.select %273, %271, %274 : vector<8x512xi1>, vector<8x512xf32>
    %c1_131 = arith.constant 1 : index
    %c0_132 = arith.constant 0 : index
    %c0_133 = arith.constant 0 : index
    %276 = vector.load %arg5[%c1_131, %c0_132, %c0_133] : memref<9x8x8xf32, #tpu.memory_space<vmem>>, vector<1x8x8xf32>
    %277 = vector.shape_cast %276 : vector<1x8x8xf32> to vector<8x8xf32>
    %cst_134 = arith.constant dense<0.000000e+00> : vector<8x512xf32>
    %278 = tpu.matmul %277, %275, %cst_134 {dimension_numbers = #tpu.dot_dimension_numbers<[1], [0], [0], [1], [0, 0, 1, 1], [], []>} : vector<8x8xf32>, vector<8x512xf32>, vector<8x512xf32> -> vector<8x512xf32>
    %279 = arith.addf %270, %278 : vector<8x512xf32>
    %c15_i32_135 = arith.constant 15 : i32
    %280 = tpu.dynamic_rotate %262 by %c15_i32_135 dim 1 : vector<8x512xf32>, i32 -> vector<8x512xf32>
    %cst_136 = arith.constant 0.000000e+00 : f32
    %281 = vector.shape_cast %32 : vector<1x512xi1> to vector<1x512xi1>
    %282 = vector.broadcast %281 : vector<1x512xi1> to vector<8x512xi1>
    %283 = vector.broadcast %cst_136 : f32 to vector<8x512xf32>
    %284 = arith.select %282, %280, %283 : vector<8x512xi1>, vector<8x512xf32>
    %c2_137 = arith.constant 2 : index
    %c0_138 = arith.constant 0 : index
    %c0_139 = arith.constant 0 : index
    %285 = vector.load %arg5[%c2_137, %c0_138, %c0_139] : memref<9x8x8xf32, #tpu.memory_space<vmem>>, vector<1x8x8xf32>
    %286 = vector.shape_cast %285 : vector<1x8x8xf32> to vector<8x8xf32>
    %cst_140 = arith.constant dense<0.000000e+00> : vector<8x512xf32>
    %287 = tpu.matmul %286, %284, %cst_140 {dimension_numbers = #tpu.dot_dimension_numbers<[1], [0], [0], [1], [0, 0, 1, 1], [], []>} : vector<8x8xf32>, vector<8x512xf32>, vector<8x512xf32> -> vector<8x512xf32>
    %288 = arith.addf %279, %287 : vector<8x512xf32>
    %c1_i32_141 = arith.constant 1 : i32
    %289 = tpu.dynamic_rotate %262 by %c1_i32_141 dim 1 : vector<8x512xf32>, i32 -> vector<8x512xf32>
    %cst_142 = arith.constant 0.000000e+00 : f32
    %290 = vector.shape_cast %43 : vector<1x512xi1> to vector<1x512xi1>
    %291 = vector.broadcast %290 : vector<1x512xi1> to vector<8x512xi1>
    %292 = vector.broadcast %cst_142 : f32 to vector<8x512xf32>
    %293 = arith.select %291, %289, %292 : vector<8x512xi1>, vector<8x512xf32>
    %c3_143 = arith.constant 3 : index
    %c0_144 = arith.constant 0 : index
    %c0_145 = arith.constant 0 : index
    %294 = vector.load %arg5[%c3_143, %c0_144, %c0_145] : memref<9x8x8xf32, #tpu.memory_space<vmem>>, vector<1x8x8xf32>
    %295 = vector.shape_cast %294 : vector<1x8x8xf32> to vector<8x8xf32>
    %cst_146 = arith.constant dense<0.000000e+00> : vector<8x512xf32>
    %296 = tpu.matmul %295, %293, %cst_146 {dimension_numbers = #tpu.dot_dimension_numbers<[1], [0], [0], [1], [0, 0, 1, 1], [], []>} : vector<8x8xf32>, vector<8x512xf32>, vector<8x512xf32> -> vector<8x512xf32>
    %297 = arith.addf %288, %296 : vector<8x512xf32>
    %c4_147 = arith.constant 4 : index
    %c0_148 = arith.constant 0 : index
    %c0_149 = arith.constant 0 : index
    %298 = vector.load %arg5[%c4_147, %c0_148, %c0_149] : memref<9x8x8xf32, #tpu.memory_space<vmem>>, vector<1x8x8xf32>
    %299 = vector.shape_cast %298 : vector<1x8x8xf32> to vector<8x8xf32>
    %cst_150 = arith.constant dense<0.000000e+00> : vector<8x512xf32>
    %300 = tpu.matmul %299, %262, %cst_150 {dimension_numbers = #tpu.dot_dimension_numbers<[1], [0], [0], [1], [0, 0, 1, 1], [], []>} : vector<8x8xf32>, vector<8x512xf32>, vector<8x512xf32> -> vector<8x512xf32>
    %301 = arith.addf %297, %300 : vector<8x512xf32>
    %c511_i32_151 = arith.constant 511 : i32
    %302 = tpu.dynamic_rotate %262 by %c511_i32_151 dim 1 : vector<8x512xf32>, i32 -> vector<8x512xf32>
    %cst_152 = arith.constant 0.000000e+00 : f32
    %303 = vector.shape_cast %58 : vector<1x512xi1> to vector<1x512xi1>
    %304 = vector.broadcast %303 : vector<1x512xi1> to vector<8x512xi1>
    %305 = vector.broadcast %cst_152 : f32 to vector<8x512xf32>
    %306 = arith.select %304, %302, %305 : vector<8x512xi1>, vector<8x512xf32>
    %c5_153 = arith.constant 5 : index
    %c0_154 = arith.constant 0 : index
    %c0_155 = arith.constant 0 : index
    %307 = vector.load %arg5[%c5_153, %c0_154, %c0_155] : memref<9x8x8xf32, #tpu.memory_space<vmem>>, vector<1x8x8xf32>
    %308 = vector.shape_cast %307 : vector<1x8x8xf32> to vector<8x8xf32>
    %cst_156 = arith.constant dense<0.000000e+00> : vector<8x512xf32>
    %309 = tpu.matmul %308, %306, %cst_156 {dimension_numbers = #tpu.dot_dimension_numbers<[1], [0], [0], [1], [0, 0, 1, 1], [], []>} : vector<8x8xf32>, vector<8x512xf32>, vector<8x512xf32> -> vector<8x512xf32>
    %310 = arith.addf %301, %309 : vector<8x512xf32>
    %c497_i32_157 = arith.constant 497 : i32
    %311 = tpu.dynamic_rotate %262 by %c497_i32_157 dim 1 : vector<8x512xf32>, i32 -> vector<8x512xf32>
    %cst_158 = arith.constant 0.000000e+00 : f32
    %312 = vector.shape_cast %72 : vector<1x512xi1> to vector<1x512xi1>
    %313 = vector.broadcast %312 : vector<1x512xi1> to vector<8x512xi1>
    %314 = vector.broadcast %cst_158 : f32 to vector<8x512xf32>
    %315 = arith.select %313, %311, %314 : vector<8x512xi1>, vector<8x512xf32>
    %c6_159 = arith.constant 6 : index
    %c0_160 = arith.constant 0 : index
    %c0_161 = arith.constant 0 : index
    %316 = vector.load %arg5[%c6_159, %c0_160, %c0_161] : memref<9x8x8xf32, #tpu.memory_space<vmem>>, vector<1x8x8xf32>
    %317 = vector.shape_cast %316 : vector<1x8x8xf32> to vector<8x8xf32>
    %cst_162 = arith.constant dense<0.000000e+00> : vector<8x512xf32>
    %318 = tpu.matmul %317, %315, %cst_162 {dimension_numbers = #tpu.dot_dimension_numbers<[1], [0], [0], [1], [0, 0, 1, 1], [], []>} : vector<8x8xf32>, vector<8x512xf32>, vector<8x512xf32> -> vector<8x512xf32>
    %319 = arith.addf %310, %318 : vector<8x512xf32>
    %c496_i32_163 = arith.constant 496 : i32
    %320 = tpu.dynamic_rotate %262 by %c496_i32_163 dim 1 : vector<8x512xf32>, i32 -> vector<8x512xf32>
    %cst_164 = arith.constant 0.000000e+00 : f32
    %321 = vector.shape_cast %83 : vector<1x512xi1> to vector<1x512xi1>
    %322 = vector.broadcast %321 : vector<1x512xi1> to vector<8x512xi1>
    %323 = vector.broadcast %cst_164 : f32 to vector<8x512xf32>
    %324 = arith.select %322, %320, %323 : vector<8x512xi1>, vector<8x512xf32>
    %c7_165 = arith.constant 7 : index
    %c0_166 = arith.constant 0 : index
    %c0_167 = arith.constant 0 : index
    %325 = vector.load %arg5[%c7_165, %c0_166, %c0_167] : memref<9x8x8xf32, #tpu.memory_space<vmem>>, vector<1x8x8xf32>
    %326 = vector.shape_cast %325 : vector<1x8x8xf32> to vector<8x8xf32>
    %cst_168 = arith.constant dense<0.000000e+00> : vector<8x512xf32>
    %327 = tpu.matmul %326, %324, %cst_168 {dimension_numbers = #tpu.dot_dimension_numbers<[1], [0], [0], [1], [0, 0, 1, 1], [], []>} : vector<8x8xf32>, vector<8x512xf32>, vector<8x512xf32> -> vector<8x512xf32>
    %328 = arith.addf %319, %327 : vector<8x512xf32>
    %c495_i32_169 = arith.constant 495 : i32
    %329 = tpu.dynamic_rotate %262 by %c495_i32_169 dim 1 : vector<8x512xf32>, i32 -> vector<8x512xf32>
    %cst_170 = arith.constant 0.000000e+00 : f32
    %330 = vector.shape_cast %97 : vector<1x512xi1> to vector<1x512xi1>
    %331 = vector.broadcast %330 : vector<1x512xi1> to vector<8x512xi1>
    %332 = vector.broadcast %cst_170 : f32 to vector<8x512xf32>
    %333 = arith.select %331, %329, %332 : vector<8x512xi1>, vector<8x512xf32>
    %c8_171 = arith.constant 8 : index
    %c0_172 = arith.constant 0 : index
    %c0_173 = arith.constant 0 : index
    %334 = vector.load %arg5[%c8_171, %c0_172, %c0_173] : memref<9x8x8xf32, #tpu.memory_space<vmem>>, vector<1x8x8xf32>
    %335 = vector.shape_cast %334 : vector<1x8x8xf32> to vector<8x8xf32>
    %cst_174 = arith.constant dense<0.000000e+00> : vector<8x512xf32>
    %336 = tpu.matmul %335, %333, %cst_174 {dimension_numbers = #tpu.dot_dimension_numbers<[1], [0], [0], [1], [0, 0, 1, 1], [], []>} : vector<8x8xf32>, vector<8x512xf32>, vector<8x512xf32> -> vector<8x512xf32>
    %337 = arith.addf %328, %336 : vector<8x512xf32>
    %338 = arith.addf %337, %132 : vector<8x512xf32>
    %cst_175 = arith.constant 2.000000e+01 : f32
    %339 = vector.broadcast %cst_175 : f32 to vector<8x512xf32>
    %340 = arith.cmpf ogt, %338, %339 : vector<8x512xf32>
    %cst_176 = arith.constant 2.000000e+01 : f32
    %341 = vector.broadcast %cst_176 : f32 to vector<8x512xf32>
    %342 = arith.minimumf %338, %341 : vector<8x512xf32>
    %343 = math.exp %342 : vector<8x512xf32>
    %344 = math.log1p %343 : vector<8x512xf32>
    %345 = arith.select %340, %338, %344 : vector<8x512xi1>, vector<8x512xf32>
    %cst_177 = arith.constant dense<0.000000e+00> : vector<8xf32>
    %346 = vector.multi_reduction <add>, %345, %cst_177 [1] : vector<8x512xf32> to vector<8xf32>
    %347 = vector.shape_cast %346 : vector<8xf32> to vector<8x1xf32>
    %348 = arith.mulf %345, %345 : vector<8x512xf32>
    %cst_178 = arith.constant dense<0.000000e+00> : vector<8xf32>
    %349 = vector.multi_reduction <add>, %348, %cst_178 [1] : vector<8x512xf32> to vector<8xf32>
    %350 = vector.shape_cast %349 : vector<8xf32> to vector<8x1xf32>
    %cst_179 = arith.constant 0.001953125 : f32
    %351 = vector.broadcast %cst_179 : f32 to vector<8x1xf32>
    %352 = arith.mulf %347, %351 : vector<8x1xf32>
    %cst_180 = arith.constant 0.001953125 : f32
    %353 = vector.broadcast %cst_180 : f32 to vector<8x1xf32>
    %354 = arith.mulf %350, %353 : vector<8x1xf32>
    %355 = arith.mulf %352, %352 : vector<8x1xf32>
    %356 = arith.subf %354, %355 : vector<8x1xf32>
    %cst_181 = arith.constant 0.000000e+00 : f32
    %357 = vector.broadcast %cst_181 : f32 to vector<8x1xf32>
    %358 = arith.maximumf %356, %357 : vector<8x1xf32>
    %359 = vector.broadcast %352 : vector<8x1xf32> to vector<8x512xf32>
    %360 = arith.subf %345, %359 : vector<8x512xf32>
    %cst_182 = arith.constant 9.99999974E-6 : f32
    %361 = vector.broadcast %cst_182 : f32 to vector<8x1xf32>
    %362 = arith.addf %358, %361 : vector<8x1xf32>
    %363 = math.rsqrt %362 : vector<8x1xf32>
    %364 = vector.broadcast %363 : vector<8x1xf32> to vector<8x512xf32>
    %365 = arith.mulf %360, %364 : vector<8x512xf32>
    %c0_183 = arith.constant 0 : index
    %c0_184 = arith.constant 0 : index
    %366 = vector.load %arg6[%c0_183, %c0_184] : memref<8x512xf32, #tpu.memory_space<vmem>>, vector<8x512xf32>
    tpu.vector_store %arg6[%c0_183, %c0_184], %365 {strides = array<i32>} : memref<8x512xf32, #tpu.memory_space<vmem>>, vector<8x512xf32>,
    return
  }
}

</mosaic_0001>

<bundles_post_ra>
// kernel: tpu_custom_call.1
= control target key start
LH: loop header
LB: loop body
LE: loop exit
PB: predicated region body
PF: predicated region fallthrough
CT: control target
= control target key end

     0   :  { %s5596_s25 = smov 16   ;;  %v6797_v4 = vmov 0.0   ;;  %s6758_s0 = inlined_call_operand.vmem [shape: f32[4,512], index: 0, kind: input, shape index: {}]   ;;  %s6759_s1 = inlined_call_operand.vmem [shape: s32[1,512], index: 1, kind: input, shape index: {}]   ;;  %s6760_s2 = inlined_call_operand.vmem [shape: s32[1,512], index: 2, kind: input, shape index: {}]   ;;  %s6761_s3 = inlined_call_operand.vmem [shape: f32[9,8,4], index: 3, kind: input, shape index: {}]   ;;  %s6762_s4 = inlined_call_operand.vmem [shape: f32[9,8,8], index: 4, kind: input, shape index: {}]   ;;  %s6763_s5 = inlined_call_operand.vmem [shape: f32[9,8,8], index: 5, kind: input, shape index: {}]   ;;  %s6764_s6 = inlined_call_operand.hbm [shape: f32[8,512], index: 6, kind: output, shape index: {}]  }
   0x1   :  { %v5653_v0 = vld [vmem:[%s6758_s0] sm:$0xff]  ;;  %v5658_v1 = vld [vmem:[%s6758_s0 + $0x8] sm:$0xff]  ;;  %199 = vmatprep.mubr.f32.mxu0 %v6797_v4  ;;  %270 = vmatprep.mubr.f32.mxu1 %v6797_v4 }
   0x2   :  { %78 = vrot.lane.b32.xlu0 %v5653_v0, %s5596_s25  ;;  %v5664_v2 = vcombine.high %v5658_v1, %v5658_v1  ;;  %v5668_v3 = vcombine.high %v5653_v0, %v5653_v0 }
   0x4   :  { %84 = vrot.lane.b32.xlu1 %v5664_v2, %s5596_s25 }
   0x6   :  { %80 = vrot.lane.b32.xlu0 %v5668_v3, %s5596_s25 }
   0x7   :  { %11 = vsyncpa [#allocation3], 0  ;;  %s5598_s0 = smov 17   ;;  %s5599_s26 = smov 15   ;;  %v42_v5 = vlaneseq  ;;  %v5737_v6 = vld [vmem:[%s6759_s1] sm:$0xf] }
   0x8   :  { %82 = vrot.lane.b32.xlu1 %v5658_v1, %s5596_s25  ;;  %s5600_s27 = smov 1   ;;  %s5601_s28 = smov 127   ;;  %v5742_v8 = vld [vmem:[%s6760_s2] sm:$0xf]  ;;  %vm49_vm0 = vcmp.ge.s32.totalorder %v5737_v6, 1  ;;  %v6799_v12 = vmov 0  }
   0x9   :  { %s5602_s29 = smov 113   ;;  %s5603_s30 = smov 112   ;;  %v54_v7 = vshrl.u32 %v42_v5, 7  ;;  %vm6767_vm1 = vcmp.ge.s32.totalorder %v5742_v8, 1  ;;  %v5750_v11 = vand.u32 127, %v42_v5  ;;  %v91_v13 = vsel %vm49_vm0, 1, %v6799_v12 }
   0xa   :  { %34 = vrot.lane.b32.xlu0 %v5653_v0, %s5598_s0  ;;  %s5604_s7 = smov 111   ;;  %vm51_vm2 = vmand %vm49_vm0, %vm6767_vm1  ;;  %vm6772_vm5 = vcmask 1043456   ;;  %vm6768_vm7 = vcmp.lt.s32.totalorder %v5742_v8, 15  ;;  %v5222_v33 = vld [vmem:[%s6761_s3 + $0x8] sm:$0xff]  ;;  %vm6774_vm10 = vcmask 31744   ;;  %v6827_v51 = vmov 0 }
   0xb   :  { %v5745_v9 = vsub.s32 1, %v54_v7  ;;  %v5747_v10 = vsub.s32 0, %v54_v7  ;;  %v5755_v14 = vsub.s32 3, %v54_v7  ;;  %v5757_v15 = vsub.s32 2, %v54_v7  ;;  %vm448_vm11 = vmand %vm49_vm0, %vm6768_vm7  ;;  %v77_v56 = vld [vmem:[%s6761_s3] sm:$0xff]  ;;  %s5607_s2 = smov 34  }
   0xc   :  { %36 = vrot.lane.b32.xlu1 %v5668_v3, %s5598_s0  ;;  %vm6766_vm3 = vcmp.lt.s32.totalorder %v5750_v11, 16  ;;  %v52_v22 = vsel %vm51_vm2, 1, %v6799_v12  ;;  %vm6765_vm12 = vcmp.lt.s32.totalorder %v5750_v11, 17  ;;  %v449_v45 = vsel %vm448_vm11, 1, %v6799_v12  ;;  %s5608_s12 = smov 30   ;;  %s5609_s13 = smov 2  }
   0xd   :  { %v99_v16 = vrot.slane %v91_v13, %v5745_v9  ;;  %v95_v18 = vrot.slane %v91_v13, %v5747_v10  ;;  %v107_v19 = vrot.slane %v91_v13, %v5755_v14  ;;  %v103_v20 = vrot.slane %v91_v13, %v5757_v15  ;;  %s5610_s14 = smov 126   ;;  %s5611_s15 = smov 98   ;;  %v3653_v30 = vld [vmem:[%s6763_s5] sm:$0xff] }
   0xe   :  { %40 = vrot.lane.b32.xlu0 %v5664_v2, %s5598_s0  ;;  %v60_v29 = vrot.slane %v52_v22, %v5745_v9  ;;  %v56_v37 = vrot.slane %v52_v22, %v5747_v10  ;;  %v64_v42 = vrot.slane %v52_v22, %v5757_v15  ;;  %v68_v43 = vrot.slane %v52_v22, %v5755_v14  ;;  %s5612_s16 = smov 96   ;;  %s5613_s17 = smov 94  }
   0xf   :  { %vm5769_vm4 = vcmp.eq.s32.totalorder %v99_v16, 1  ;;  %vm5775_vm6 = vcmp.eq.s32.totalorder %v95_v18, 1  ;;  %vm5782_vm8 = vcmp.eq.s32.totalorder %v107_v19, 1  ;;  %vm5787_vm9 = vcmp.eq.s32.totalorder %v103_v20, 1 }
  0x10   :  { %38 = vrot.lane.b32.xlu1 %v5658_v1, %s5598_s0  ;;  %vm5816_vm13 = vcmp.eq.s32.totalorder %v60_v29, 1  ;;  %vm5828_vm14 = vcmp.eq.s32.totalorder %v56_v37, 1  ;;  %vm5838_vm15 = vcmp.eq.s32.totalorder %v64_v42, 1  ;;  %vm5842_vm0 = vcmp.eq.s32.totalorder %v68_v43, 1 }
  0x11   :  { %v6828_v51 = vsel %vm5838_vm15, 4294967295, %v6827_v51  ;;  %v6829_v52 = vmov 0  ;;  %v457_v53 = vrot.slane %v449_v45, %v5745_v9  ;;  %v453_v59 = vrot.slane %v449_v45, %v5747_v10 }
  0x12   :  { %434 = vrot.lane.b32.xlu0 %v5653_v0, %s5599_s26  ;;  %v6830_v52 = vsel %vm5842_vm0, 4294967295, %v6829_v52  ;;  %vm6770_vm2 = vcmp.lt.s32.totalorder %v5750_v11, 15  ;;  %v6831_v63 = vmov 0  ;;  %v461_v5 = vrot.slane %v449_v45, %v5757_v15 }
  0x13   :  { %vm5865_vm11 = vcmp.eq.s32.totalorder %v457_v53, 1  ;;  %v465_v7 = vrot.slane %v449_v45, %v5755_v14  ;;  %v650_v16 = vsel %vm6767_vm1, 1, %v6799_v12  ;;  %v6833_v18 = vmov 0 }
  0x14   :  { %436 = vrot.lane.b32.xlu1 %v5668_v3, %s5599_s26  ;;  %v6832_v63 = vsel %vm5865_vm11, 4294967295, %v6831_v63  ;;  %v6835_v22 = vmov 0  ;;  %vm6779_vm7 = vcmp.lt.s32.totalorder %v5750_v11, 1  ;;  %v6842_v45 = vmov 0 }
  0x15   :  { %vm5893_vm1 = vcmp.eq.s32.totalorder %v465_v7, 1  ;;  %v6847_v53 = vmov 0  ;;  %v6854_v7 = vmov 0 }
  0x16   :  { %440 = vrot.lane.b32.xlu0 %v5664_v2, %s5599_s26 }
  0x18   :  { %438 = vrot.lane.b32.xlu1 %v5658_v1, %s5599_s26 }
  0x1a   :  { %637 = vrot.lane.b32.xlu0 %v5653_v0, %s5600_s27 }
  0x1c   :  { %639 = vrot.lane.b32.xlu1 %v5668_v3, %s5600_s27 }
  0x1e   :  { %643 = vrot.lane.b32.xlu0 %v5664_v2, %s5600_s27 }
  0x20   :  { %641 = vrot.lane.b32.xlu1 %v5658_v1, %s5600_s27 }
  0x22   :  { %999 = vrot.lane.b32.xlu0 %v5668_v3, %s5601_s28 }
  0x24   :  { %1001 = vrot.lane.b32.xlu1 %v5658_v1, %s5601_s28 }
  0x26   :  { %997 = vrot.lane.b32.xlu0 %v5653_v0, %s5601_s28 }
  0x28   :  { %1003 = vrot.lane.b32.xlu1 %v5664_v2, %s5601_s28 }
  0x2a   :  { %1200 = vrot.lane.b32.xlu0 %v5668_v3, %s5602_s29 }
  0x2c   :  { %1202 = vrot.lane.b32.xlu1 %v5658_v1, %s5602_s29 }
  0x2e   :  { %1198 = vrot.lane.b32.xlu0 %v5653_v0, %s5602_s29 }
  0x30   :  { %1204 = vrot.lane.b32.xlu1 %v5664_v2, %s5602_s29 }
  0x32   :  { %1403 = vrot.lane.b32.xlu0 %v5668_v3, %s5603_s30 }
  0x34   :  { %1405 = vrot.lane.b32.xlu1 %v5658_v1, %s5603_s30 }
  0x36   :  { %1401 = vrot.lane.b32.xlu0 %v5653_v0, %s5603_s30 }
  0x38   :  { %1407 = vrot.lane.b32.xlu1 %v5664_v2, %s5603_s30 }
  0x3a   :  { %1604 = vrot.lane.b32.xlu0 %v5668_v3, %s5604_s7 }
  0x3c   :  { %1606 = vrot.lane.b32.xlu1 %v5658_v1, %s5604_s7 }
  0x3e   :  { %1602 = vrot.lane.b32.xlu0 %v5653_v0, %s5604_s7 }
  0x40   :  { %1608 = vrot.lane.b32.xlu1 %v5664_v2, %s5604_s7 }
  0x74   :  { %v79_v17 = vpop.permute.xlu0 %78 }
  0x76   :  { %v85_v21 = vpop.permute.xlu1 %84 }
  0x77   :  { %v90_v25 = vsel %vm6766_vm3, %v85_v21, %v79_v17 }
  0x78   :  { %v81_v24 = vpop.permute.xlu0 %80  ;;  %v112_v34 = vsel %vm5775_vm6, %v90_v25, 0.0  ;;  %v658_v25 = vrot.slane %v650_v16, %v5745_v9 }
  0x79   :  { %v89_v27 = vsel %vm6766_vm3, %v79_v17, %v81_v24 }
  0x7a   :  { %v83_v31 = vpop.permute.xlu1 %82  ;;  %v113_v32 = vsel %vm5769_vm4, %v89_v27, 0.0 }
  0x7b   :  { %5223 = vmatprep.subr.msk.mxu0 %vm6772_vm5, %v113_v32  ;;  %v87_v35 = vsel %vm6766_vm3, %v83_v31, %v85_v21  ;;  %v88_v36 = vsel %vm6766_vm3, %v81_v24, %v83_v31  ;;  %vm5889_vm3 = vcmp.eq.s32.totalorder %v461_v5, 1  ;;  %v6837_v24 = vmov 0  ;;  %v5235_v31 = vld [vmem:[%s6761_s3 + $0x10] sm:$0xff] }
  0x7c   :  { %v35_v38 = vpop.permute.xlu0 %34  ;;  %5224 = vmatpush1.msk.msra.mxu0 %vm6772_vm5, %v112_v34  ;;  %v115_v39 = vsel %vm5782_vm8, %v87_v35, 0.0  ;;  %v114_v40 = vsel %vm5787_vm9, %v88_v36, 0.0  ;;  %v6836_v22 = vsel %vm5889_vm3, 4294967295, %v6835_v22  ;;  %v6838_v24 = vsel %vm5893_vm1, 4294967295, %v6837_v24 }
  0x7d   :  { %5225 = vmatmul.mubr.msk.f32.vlgmr.msra.gmra.mrb[0].mxu0 %vm6774_vm10, %v5222_v33  ;;  %5226 = vmatprep.subr.msk.mxu1 %vm6772_vm5, %v115_v39  ;;  %v654_v34 = vrot.slane %v650_v16, %v5747_v10  ;;  %v662_v39 = vrot.slane %v650_v16, %v5757_v15 }
  0x7e   :  { %v37_v44 = vpop.permute.xlu1 %36  ;;  %5227 = vmatpush1.msk.msra.mxu1 %vm6772_vm5, %v114_v40  ;;  %356 = vmatprep.mubr.f32.mxu0 %v6797_v4  ;;  %v666_v40 = vrot.slane %v650_v16, %v5755_v14 }
  0x7f   :  { %v47_v46 = vsel %vm6765_vm12, %v35_v38, %v37_v44  ;;  %5228 = vmatmul.mubr.msk.f32.vlgmr.msra.gmra.mrb[0].mxu1 %vm6774_vm10, %v5222_v33 }
  0x80   :  { %v74_v48 = vsel %vm5816_vm13, %v47_v46, 0.0  ;;  %v41_v49 = vpop.permute.xlu0 %40  ;;  %427 = vmatprep.mubr.f32.mxu1 %v6797_v4 }
  0x81   :  { %v48_v50 = vsel %vm6765_vm12, %v41_v49, %v35_v38  ;;  %5229 = vmatprep.subr.msk.mxu0 %vm6772_vm5, %v74_v48  ;;  %v6839_v38 = vmov 0 }
  0x82   :  { %v73_v54 = vsel %vm5828_vm14, %v48_v50, 0.0  ;;  %v39_v55 = vpop.permute.xlu1 %38  ;;  %v6845_v50 = vmov 0 }
  0x83   :  { %v45_v57 = vsel %vm6765_vm12, %v39_v55, %v41_v49  ;;  %v46_v58 = vsel %vm6765_vm12, %v37_v44, %v39_v55  ;;  %5230 = vmatpush1.msk.msra.mxu0 %vm6772_vm5, %v73_v54  ;;  %vm5879_vm12 = vcmp.eq.s32.totalorder %v453_v59, 1 }
  0x84   :  { %v75_v60 = vsel %vm5838_vm15, %v46_v58, 0.0  ;;  %v76_v61 = vsel %vm5842_vm0, %v45_v57, 0.0  ;;  %v435_v62 = vpop.permute.xlu0 %434  ;;  %v6834_v18 = vsel %vm5879_vm12, 4294967295, %v6833_v18  ;;  %v5242_v57 = vld [vmem:[%s6761_s3 + $0x18] sm:$0xff] }
  0x85   :  { %5231 = vmatmul.mubr.msk.f32.vlgmr.msra.gmra.mrb[0].mxu0 %vm6774_vm10, %v77_v56  ;;  %5232 = vmatprep.subr.msk.mxu1 %vm6772_vm5, %v76_v61 }
  0x86   :  { %v437_v13 = vpop.permute.xlu1 %436  ;;  %5233 = vmatpush1.msk.msra.mxu1 %vm6772_vm5, %v75_v60  ;;  %555 = vmatprep.mubr.f32.mxu0 %v6797_v4 }
  0x87   :  { %v445_v17 = vsel %vm6770_vm2, %v435_v62, %v437_v13  ;;  %5234 = vmatmul.mubr.msk.f32.vlgmr.msra.gmra.mrb[0].mxu1 %vm6774_vm10, %v77_v56 }
  0x88   :  { %v471_v19 = vsel %vm5865_vm11, %v445_v17, 0.0  ;;  %v441_v20 = vpop.permute.xlu0 %440  ;;  %626 = vmatprep.mubr.f32.mxu1 %v6797_v4 }
  0x89   :  { %v446_v21 = vsel %vm6770_vm2, %v441_v20, %v435_v62  ;;  %5236 = vmatprep.subr.msk.mxu0 %vm6772_vm5, %v471_v19 }
  0x8a   :  { %v470_v27 = vsel %vm5879_vm12, %v446_v21, 0.0  ;;  %v439_v29 = vpop.permute.xlu1 %438  ;;  %vm5916_vm12 = vcmp.eq.s32.totalorder %v658_v25, 1  ;;  %v6859_v25 = vmov 0 }
  0x8b   :  { %v443_v32 = vsel %vm6770_vm2, %v439_v29, %v441_v20  ;;  %v444_v33 = vsel %vm6770_vm2, %v437_v13, %v439_v29  ;;  %5237 = vmatpush1.msk.msra.mxu0 %vm6772_vm5, %v470_v27  ;;  %v6840_v38 = vsel %vm5916_vm12, 4294967295, %v6839_v38  ;;  %vm6841_vm2 = vcmp.lt.s32.totalorder %v5742_v8, 15 }
  0x8c   :  { %v472_v35 = vsel %vm5889_vm3, %v444_v33, 0.0  ;;  %v473_v36 = vsel %vm5893_vm1, %v443_v32, 0.0  ;;  %v638_v37 = vpop.permute.xlu0 %637  ;;  %v1010_v43 = vsel %vm6841_vm2, 1, %v6799_v12  ;;  %vm5930_vm3 = vcmp.eq.s32.totalorder %v654_v34, 1 }
  0x8d   :  { %5238 = vmatmul.mubr.msk.f32.vlgmr.msra.gmra.mrb[0].mxu0 %vm6774_vm10, %v5235_v31  ;;  %5239 = vmatprep.subr.msk.mxu1 %vm6772_vm5, %v473_v36  ;;  %v6843_v45 = vsel %vm5930_vm3, 4294967295, %v6842_v45  ;;  %vm6844_vm2 = vcmask 1043456   ;;  %vm5941_vm1 = vcmp.eq.s32.totalorder %v662_v39, 1  ;;  %v1018_v54 = vrot.slane %v1010_v43, %v5745_v9 }
  0x8e   :  { %v640_v42 = vpop.permute.xlu1 %639  ;;  %5240 = vmatpush1.msk.msra.mxu1 %vm6772_vm5, %v472_v35  ;;  %756 = vmatprep.mubr.f32.mxu0 %v6797_v4  ;;  %v6846_v50 = vsel %vm5941_vm1, 4294967295, %v6845_v50  ;;  %vm6849_vm5 = vcmp.ge.s32.totalorder %v5742_v8, 1  ;;  %vm6851_vm15 = vmmov %vm6844_vm2  ;;  %v1014_v5 = vrot.slane %v1010_v43, %v5747_v10  ;;  %v1026_v13 = vrot.slane %v1010_v43, %v5755_v14 }
  0x8f   :  { %v648_v44 = vsel %vm6779_vm7, %v638_v37, %v640_v42  ;;  %5241 = vmatmul.mubr.msk.f32.vlgmr.msra.gmra.mrb[0].mxu1 %vm6774_vm10, %v5235_v31  ;;  %vm5945_vm10 = vcmp.eq.s32.totalorder %v666_v40, 1  ;;  %vm5974_vm0 = vcmp.eq.s32.totalorder %v1018_v54, 1  ;;  %v6862_v27 = vmov 0 }
  0x90   :  { %v672_v46 = vsel %vm5916_vm12, %v648_v44, 0.0  ;;  %v644_v48 = vpop.permute.xlu0 %643  ;;  %827 = vmatprep.mubr.f32.mxu1 %v6797_v4  ;;  %v6848_v53 = vsel %vm5945_vm10, 4294967295, %v6847_v53  ;;  %vm6850_vm12 = vcmp.lt.s32.totalorder %v5737_v6, 15  ;;  %v6855_v7 = vsel %vm5974_vm0, 4294967295, %v6854_v7 }
  0x91   :  { %v649_v49 = vsel %vm6779_vm7, %v644_v48, %v638_v37  ;;  %5243 = vmatprep.subr.msk.mxu0 %vm6844_vm2, %v672_v46  ;;  %vm1212_vm11 = vmand %vm6850_vm12, %vm6849_vm5  ;;  %v6866_v32 = vmov 0  ;;  %v6870_v40 = vmov 0 }
  0x92   :  { %v671_v55 = vsel %vm5930_vm3, %v649_v49, 0.0  ;;  %v642_v56 = vpop.permute.xlu1 %641  ;;  %vm6782_vm3 = vcmp.lt.s32.totalorder %v5750_v11, 127  ;;  %v1213_v17 = vsel %vm1212_vm11, 1, %v6799_v12  ;;  %vm5999_vm11 = vcmp.eq.s32.totalorder %v1026_v13, 1 }
  0x93   :  { %v646_v58 = vsel %vm6779_vm7, %v642_v56, %v644_v48  ;;  %v647_v59 = vsel %vm6779_vm7, %v640_v42, %v642_v56  ;;  %5244 = vmatpush1.msk.msra.mxu0 %vm6844_vm2, %v671_v55  ;;  %vm6852_vm2 = vcmask 31744   ;;  %vm6853_vm7 = vmmov %vm6851_vm15  ;;  %v6863_v27 = vsel %vm5999_vm11, 4294967295, %v6862_v27 }
  0x94   :  { %v673_v60 = vsel %vm5941_vm1, %v647_v59, 0.0  ;;  %v674_v61 = vsel %vm5945_vm10, %v646_v58, 0.0  ;;  %v1000_v62 = vpop.permute.xlu0 %999  ;;  %5250 = vmatprep.subr.msk.mxu0 %vm6851_vm15, %v5668_v3  ;;  %vm6856_vm5 = vmmov %vm6853_vm7  ;;  %v1022_v3 = vrot.slane %v1010_v43, %v5757_v15  ;;  %v1221_v29 = vrot.slane %v1213_v17, %v5745_v9  ;;  %v5256_v59 = vld [vmem:[%s6761_s3 + $0x28] sm:$0xff] }
  0x95   :  { %5245 = vmatmul.mubr.msk.f32.vlgmr.msra.gmra.mrb[0].mxu0 %vm6852_vm2, %v5242_v57  ;;  %5246 = vmatprep.subr.msk.mxu1 %vm6853_vm7, %v674_v61  ;;  %vm6857_vm12 = vmmov %vm6856_vm5  ;;  %vm5990_vm7 = vcmp.eq.s32.totalorder %v1014_v5, 1  ;;  %v1217_v37 = vrot.slane %v1213_v17, %v5747_v10  ;;  %v1229_v42 = vrot.slane %v1213_v17, %v5755_v14  ;;  %v1225_v44 = vrot.slane %v1213_v17, %v5757_v15 }
  0x96   :  { %5247 = vmatpush1.msk.msra.mxu1 %vm6856_vm5, %v673_v60  ;;  %v1002_v16 = vpop.permute.xlu1 %1001  ;;  %5251 = vmatpush1.msk.msra.mxu0 %vm6857_vm12, %v5653_v0  ;;  %vm6858_vm15 = vmmov %vm6852_vm2  ;;  %v6860_v25 = vsel %vm5990_vm7, 4294967295, %v6859_v25  ;;  %v6877_v55 = vmov 0  ;;  %v6883_v61 = vmov 0  ;;  %vm6791_vm1 = vcmp.lt.s32.totalorder %v5750_v11, 112 }
  0x97   :  { %5248 = vmatmul.mubr.msk.f32.vlgmr.msra.gmra.mrb[0].mxu1 %vm6858_vm15, %v5242_v57  ;;  %v1007_v19 = vsel %vm6782_vm3, %v1000_v62, %v1002_v16  ;;  %915 = vmatprep.mubr.f32.mxu0 %v6797_v4  ;;  %vm6861_vm2 = vmmov %vm6856_vm5  ;;  %vm6010_vm15 = vcmp.eq.s32.totalorder %v1022_v3, 1  ;;  %v6880_v57 = vmov 0 }
  0x98   :  { %v1032_v20 = vsel %vm5974_vm0, %v1007_v19, 0.0  ;;  %v998_v21 = vpop.permute.xlu0 %997  ;;  %5253 = vmatprep.subr.msk.mxu1 %vm6861_vm2, %v5664_v2  ;;  %986 = vmatprep.mubr.f32.mxu1 %v6797_v4  ;;  %vm6864_vm5 = vmmov %vm6861_vm2  ;;  %v5249_v2 = vld [vmem:[%s6761_s3 + $0x20] sm:$0xff]  ;;  %v6867_v32 = vsel %vm6010_vm15, 4294967295, %v6866_v32 }
  0x99   :  { %v1008_v0 = vsel %vm6782_vm3, %v998_v21, %v1000_v62  ;;  %5254 = vmatpush1.msk.msra.mxu1 %vm6864_vm5, %v5658_v1  ;;  %vm6865_vm12 = vmmov %vm6861_vm2  ;;  %vm6868_vm5 = vcmask 31744  }
  0x9a   :  { %5257 = vmatprep.subr.msk.mxu0 %vm6865_vm12, %v1032_v20  ;;  %v1004_v31 = vpop.permute.xlu1 %1003  ;;  %v1031_v33 = vsel %vm5990_vm7, %v1008_v0, 0.0  ;;  %vm6869_vm12 = vmmov %vm6861_vm2  ;;  %vm6028_vm7 = vcmp.eq.s32.totalorder %v1221_v29, 1  ;;  %v6890_v20 = vmov 0 }
  0x9b   :  { %v1006_v34 = vsel %vm6782_vm3, %v1002_v16, %v1004_v31  ;;  %v1009_v1 = vsel %vm6782_vm3, %v1004_v31, %v998_v21  ;;  %v6871_v40 = vsel %vm6028_vm7, 4294967295, %v6870_v40  ;;  %vm6872_vm3 = vmmov %vm6861_vm2  ;;  %vm6874_vm2 = vcmask 31744  }
  0x9c   :  { %v1034_v35 = vsel %vm5999_vm11, %v1009_v1, 0.0  ;;  %v1201_v36 = vpop.permute.xlu0 %1200  ;;  %v1033_v39 = vsel %vm6010_vm15, %v1006_v34, 0.0  ;;  %vm6876_vm15 = vmmov %vm6872_vm3  ;;  %v6894_v1 = vmov 0 }
  0x9d   :  { %5252 = vmatmul.mubr.msk.f32.vlgmr.msra.gmra.mrb[0].mxu0 %vm6868_vm5, %v5249_v2  ;;  %5260 = vmatprep.subr.msk.mxu1 %vm6869_vm12, %v1034_v35  ;;  %vm6873_vm5 = vcmp.lt.s32.totalorder %v5737_v6, 15  ;;  %vm6875_vm12 = vcmp.lt.s32.totalorder %v5750_v11, 113 }
  0x9e   :  { %5258 = vmatpush1.msk.msra.mxu0 %vm6872_vm3, %v1031_v33  ;;  %v1203_v43 = vpop.permute.xlu1 %1202  ;;  %1116 = vmatprep.mubr.f32.mxu0 %v6797_v4  ;;  %v1414_v46 = vsel %vm6873_vm5, 1, %v6799_v12  ;;  %vm6045_vm3 = vcmp.eq.s32.totalorder %v1217_v37, 1  ;;  %vm6879_vm11 = vmmov %vm6875_vm12  ;;  %vm6052_vm5 = vcmp.eq.s32.totalorder %v1229_v42, 1 }
  0x9f   :  { %5255 = vmatmul.mubr.msk.f32.vlgmr.msra.gmra.mrb[0].mxu1 %vm6874_vm2, %v5249_v2  ;;  %v1208_v48 = vsel %vm6875_vm12, %v1201_v36, %v1203_v43  ;;  %v6878_v55 = vsel %vm6045_vm3, 4294967295, %v6877_v55  ;;  %v6881_v57 = vsel %vm6052_vm5, 4294967295, %v6880_v57  ;;  %vm6882_vm2 = vmmov %vm6876_vm15  ;;  %v1422_v58 = vrot.slane %v1414_v46, %v5745_v9 }
  0xa0   :  { %v1235_v49 = vsel %vm6028_vm7, %v1208_v48, 0.0  ;;  %5261 = vmatpush1.msk.msra.mxu1 %vm6876_vm15, %v1033_v39  ;;  %v1199_v54 = vpop.permute.xlu0 %1198  ;;  %1187 = vmatprep.mubr.f32.mxu1 %v6797_v4  ;;  %vm6061_vm15 = vcmp.eq.s32.totalorder %v1225_v44, 1  ;;  %vm6885_vm12 = vmmov %vm6879_vm11  ;;  %vm6887_vm7 = vcmp.lt.s32.totalorder %v5737_v6, 15  ;;  %v1418_v17 = vrot.slane %v1414_v46, %v5747_v10  ;;  %v5263_v39 = vld [vmem:[%s6761_s3 + $0x30] sm:$0xff] }
  0xa1   :  { %v1209_v56 = vsel %vm6879_vm11, %v1199_v54, %v1201_v36  ;;  %5264 = vmatprep.subr.msk.mxu0 %vm6882_vm2, %v1235_v49  ;;  %v6884_v61 = vsel %vm6061_vm15, 4294967295, %v6883_v61  ;;  %vm6886_vm2 = vcmp.lt.s32.totalorder %v5742_v8, 15  ;;  %v1430_v21 = vrot.slane %v1414_v46, %v5755_v14 }
  0xa2   :  { %v1205_v60 = vpop.permute.xlu1 %1204  ;;  %v1234_v62 = vsel %vm6045_vm3, %v1209_v56, 0.0  ;;  %vm1615_vm0 = vmand %vm6887_vm7, %vm6886_vm2  ;;  %vm6888_vm3 = vcmask 31744   ;;  %v1426_v29 = vrot.slane %v1414_v46, %v5757_v15  ;;  %v6897_v36 = vmov 0 }
  0xa3   :  { %v1207_v5 = vsel %vm6879_vm11, %v1203_v43, %v1205_v60  ;;  %v1210_v13 = vsel %vm6885_vm12, %v1205_v60, %v1199_v54  ;;  %vm6889_vm11 = vcmask 1043456   ;;  %vm6083_vm12 = vcmp.eq.s32.totalorder %v1422_v58, 1 }
  0xa4   :  { %v1237_v16 = vsel %vm6052_vm5, %v1210_v13, 0.0  ;;  %v1404_v3 = vpop.permute.xlu0 %1403  ;;  %v1236_v19 = vsel %vm6061_vm15, %v1207_v5, 0.0  ;;  %v6891_v20 = vsel %vm6083_vm12, 4294967295, %v6890_v20  ;;  %vm6892_vm7 = vmmov %vm6889_vm11  ;;  %v1616_v2 = vsel %vm1615_vm0, 1, %v6799_v12 }
  0xa5   :  { %5259 = vmatmul.mubr.msk.f32.vlgmr.msra.gmra.mrb[0].mxu0 %vm6888_vm3, %v5256_v59  ;;  %5267 = vmatprep.subr.msk.mxu1 %vm6889_vm11, %v1237_v16  ;;  %vm6893_vm2 = vmmov %vm6892_vm7  ;;  %vm6098_vm11 = vcmp.eq.s32.totalorder %v1418_v17, 1  ;;  %vm6105_vm0 = vcmp.eq.s32.totalorder %v1430_v21, 1  ;;  %v1624_v37 = vrot.slane %v1616_v2, %v5745_v9  ;;  %v6901_v43 = vmov 0 }
  0xa6   :  { %5265 = vmatpush1.msk.msra.mxu0 %vm6892_vm7, %v1234_v62  ;;  %v1406_v0 = vpop.permute.xlu1 %1405  ;;  %1319 = vmatprep.mubr.f32.mxu0 %v6797_v4  ;;  %v6895_v1 = vsel %vm6098_vm11, 4294967295, %v6894_v1  ;;  %v6898_v36 = vsel %vm6105_vm0, 4294967295, %v6897_v36  ;;  %vm6900_vm7 = vmmov %vm6893_vm2  ;;  %v1620_v56 = vrot.slane %v1616_v2, %v5747_v10  ;;  %v1632_v60 = vrot.slane %v1616_v2, %v5755_v14 }
  0xa7   :  { %5262 = vmatmul.mubr.msk.f32.vlgmr.msra.gmra.mrb[0].mxu1 %vm6888_vm3, %v5256_v59  ;;  %v1411_v31 = vsel %vm6791_vm1, %v1404_v3, %v1406_v0  ;;  %6896 = vst [vmem:[#allocation5_spill] sm:$0xff] %v6895_v1  ;;  %6899 = vst [vmem:[#allocation6_spill] sm:$0xff] %v6898_v36  ;;  %vm6114_vm3 = vcmp.eq.s32.totalorder %v1426_v29, 1  ;;  %v6906_v59 = vmov 0  ;;  %v1628_v5 = vrot.slane %v1616_v2, %v5757_v15 }
  0xa8   :  { %v1436_v33 = vsel %vm6083_vm12, %v1411_v31, 0.0  ;;  %5268 = vmatpush1.msk.msra.mxu1 %vm6893_vm2, %v1236_v19  ;;  %v1402_v34 = vpop.permute.xlu0 %1401  ;;  %1390 = vmatprep.mubr.f32.mxu1 %v6797_v4  ;;  %v6902_v43 = vsel %vm6114_vm3, 4294967295, %v6901_v43  ;;  %vm6132_vm12 = vcmp.eq.s32.totalorder %v1624_v37, 1  ;;  %v6913_v17 = vmov 0 }
  0xa9   :  { %v1412_v35 = vsel %vm6791_vm1, %v1402_v34, %v1404_v3  ;;  %5271 = vmatprep.subr.msk.mxu0 %vm6900_vm7, %v1436_v33  ;;  %6903 = vst [vmem:[#allocation7_spill] sm:$0xff] %v6902_v43  ;;  %vm6904_vm7 = vcmask 31744   ;;  %v6907_v59 = vsel %vm6132_vm12, 4294967295, %v6906_v59  ;;  %v6917_v21 = vmov 0 }
  0xaa   :  { %v1408_v42 = vpop.permute.xlu1 %1407  ;;  %v1435_v44 = vsel %vm6098_vm11, %v1412_v35, 0.0  ;;  %vm6905_vm11 = vmmov %vm6893_vm2  ;;  %6908 = vst [vmem:[#allocation8_spill] sm:$0xff] %v6907_v59  ;;  %v6921_v2 = vmov 0  ;;  %vm1897_vm5 = vcmp.lt.s32.totalorder %v5750_v11, 34 }
  0xab   :  { %v1410_v46 = vsel %vm6791_vm1, %v1406_v0, %v1408_v42  ;;  %v1413_v48 = vsel %vm6791_vm1, %v1408_v42, %v1402_v34  ;;  %vm6909_vm1 = vmmov %vm6893_vm2  ;;  %v5270_v0 = vld [vmem:[%s6761_s3 + $0x38] sm:$0xff] }
  0xac   :  { %v1438_v49 = vsel %vm6105_vm0, %v1413_v48, 0.0  ;;  %v1605_v54 = vpop.permute.xlu0 %1604  ;;  %v1437_v58 = vsel %vm6114_vm3, %v1410_v46, 0.0  ;;  %vm6910_vm2 = vmmov %vm6904_vm7  ;;  %vm6146_vm3 = vcmp.eq.s32.totalorder %v1620_v56, 1  ;;  %vm6153_vm0 = vcmp.eq.s32.totalorder %v1632_v60, 1 }
  0xad   :  { %5266 = vmatmul.mubr.msk.f32.vlgmr.msra.gmra.mrb[0].mxu0 %vm6904_vm7, %v5263_v39  ;;  %5274 = vmatprep.subr.msk.mxu1 %vm6905_vm11, %v1438_v49  ;;  %vm6911_vm7 = vcmp.lt.s32.totalorder %v5750_v11, 111  ;;  %vm6912_vm11 = vmmov %vm6909_vm1  ;;  %v6914_v17 = vsel %vm6146_vm3, 4294967295, %v6913_v17  ;;  %v6918_v21 = vsel %vm6153_vm0, 4294967295, %v6917_v21 }
  0xae   :  { %5272 = vmatpush1.msk.msra.mxu0 %vm6909_vm1, %v1435_v44  ;;  %v1607_v62 = vpop.permute.xlu1 %1606  ;;  %1520 = vmatprep.mubr.f32.mxu0 %v6797_v4  ;;  %6915 = vst [vmem:[#allocation9_spill] sm:$0xff] %v6914_v17  ;;  %vm6916_vm1 = vmmov %vm6911_vm7 }
  0xaf   :  { %5269 = vmatmul.mubr.msk.f32.vlgmr.msra.gmra.mrb[0].mxu1 %vm6910_vm2, %v5263_v39  ;;  %v1612_v13 = vsel %vm6911_vm7, %v1605_v54, %v1607_v62  ;;  %6919 = vst [vmem:[#allocation10_spill] sm:$0xff] %v6918_v21  ;;  %vm6920_vm2 = vmmov %vm6912_vm11  ;;  %vm6161_vm7 = vcmp.eq.s32.totalorder %v1628_v5, 1  ;;  %v5277_v39 = vld [vmem:[%s6761_s3 + $0x40] sm:$0xff]  ;;  %s5606_s3 = smov 32  }
  0xb0   :  { %v1638_v16 = vsel %vm6132_vm12, %v1612_v13, 0.0  ;;  %5275 = vmatpush1.msk.msra.mxu1 %vm6912_vm11, %v1437_v58  ;;  %v1603_v3 = vpop.permute.xlu0 %1602  ;;  %1591 = vmatprep.mubr.f32.mxu1 %v6797_v4  ;;  %v6922_v2 = vsel %vm6161_vm7, 4294967295, %v6921_v2  ;;  %vm6924_vm11 = vmmov %vm6916_vm1  ;;  %vm6926_vm12 = vcmask 1043456  }
  0xb1   :  { %v1613_v19 = vsel %vm6916_vm1, %v1603_v3, %v1605_v54  ;;  %5278 = vmatprep.subr.msk.mxu0 %vm6920_vm2, %v1638_v16  ;;  %6923 = vst [vmem:[#allocation11_spill] sm:$0xff] %v6922_v2  ;;  %vm6925_vm2 = vcmask 31744   ;;  %vm6927_vm15 = vmmov %vm6926_vm12 }
  0xb2   :  { %v1609_v29 = vpop.permute.xlu1 %1608  ;;  %v1637_v31 = vsel %vm6146_vm3, %v1613_v19, 0.0  ;;  %vm6928_vm3 = vmmov %vm6925_vm2 }
  0xb3   :  { %v1611_v33 = vsel %vm6924_vm11, %v1607_v62, %v1609_v29  ;;  %v1614_v34 = vsel %vm6916_vm1, %v1609_v29, %v1603_v3  ;;  %vm6929_vm11 = vmmov %vm6926_vm12 }
  0xb4   :  { %v1640_v35 = vsel %vm6153_vm0, %v1614_v34, 0.0  ;;  %v1639_v37 = vsel %vm6161_vm7, %v1611_v33, 0.0  ;;  %vm6930_vm1 = vmmov %vm6925_vm2 }
  0xb5   :  { %5273 = vmatmul.mubr.msk.f32.vlgmr.msra.gmra.mrb[0].mxu0 %vm6925_vm2, %v5270_v0  ;;  %5281 = vmatprep.subr.msk.mxu1 %vm6926_vm12, %v1640_v35  ;;  %vm6931_vm2 = vmmov %vm6930_vm1 }
  0xb6   :  { %5279 = vmatpush1.msk.msra.mxu0 %vm6927_vm15, %v1637_v31  ;;  %1722 = vmatprep.mubr.f32.mxu0 %v6797_v4 }
  0xb7   :  { %5276 = vmatmul.mubr.msk.f32.vlgmr.msra.gmra.mrb[0].mxu1 %vm6928_vm3, %v5270_v0 }
  0xb8   :  { %5282 = vmatpush1.msk.msra.mxu1 %vm6929_vm11, %v1639_v37  ;;  %1793 = vmatprep.mubr.f32.mxu1 %v6797_v4 }
  0xbd   :  { %5280 = vmatmul.mubr.msk.f32.vlgmr.msra.gmra.mrb[0].mxu0 %vm6930_vm1, %v5277_v39 }
  0xbe   :  { %2039 = vmatprep.mubr.f32.mxu0 %v6797_v4 }
  0xbf   :  { %5283 = vmatmul.mubr.msk.f32.vlgmr.msra.gmra.mrb[0].mxu1 %vm6931_vm2, %v5277_v39 }
  0xc0   :  { %2110 = vmatprep.mubr.f32.mxu1 %v6797_v4 }
 0x190   :  { %v1724_v42 = vpop.f32.mrb[0].mxu0 }
 0x191   :  { %v1808_v44 = vmin.f32 %v1724_v42, 20.0  ;;  %v1726_v46 = vpop.f32.mrb[1].mxu0  ;;  %vm1804_vm15 = vcmp.gt.f32.partialorder %v1724_v42, 20.0 }
 0x192   :  { %v1809_v48 = vmin.f32 %v1726_v46, 20.0  ;;  %v1795_v49 = vpop.f32.mrb[0].mxu1  ;;  %vm1805_vm12 = vcmp.gt.f32.partialorder %v1726_v46, 20.0 }
 0x193   :  { %v1812_v54 = vmul.f32 1.442695, %v1808_v44  ;;  %v1810_v56 = vmin.f32 %v1795_v49, 20.0  ;;  %v6189_v58 = vpop.f32.mrb[1].mxu1  ;;  %vm1806_vm3 = vcmp.gt.f32.partialorder %v1795_v49, 20.0 }
 0x194   :  { %v1814_v60 = vmul.f32 1.442695, %v1809_v48  ;;  %v1811_v62 = vmin.f32 %v6189_v58, 20.0 }
 0x195   :  { %5517 = vpow2.f32 %v1812_v54  ;;  %v1816_v5 = vmul.f32 1.442695, %v1810_v56 }
 0x196   :  { %5519 = vpow2.f32 %v1814_v60  ;;  %v1818_v13 = vmul.f32 1.442695, %v1811_v62 }
 0x197   :  { %5521 = vpow2.f32 %v1816_v5 }
 0x198   :  { %5523 = vpow2.f32 %v1818_v13 }
 0x19f   :  { %v5518_v16 = vpop.eup %5517 }
 0x1a0   :  { %v5520_v3 = vpop.eup %5519  ;;  %v1820_v19 = vadd.f32 1.0, %v5518_v16  ;;  %v1823_v35 = vmul.f32 -0.5, %v5518_v16  ;;  %v1826_v54 = vand.u32 2147483647, %v5518_v16 }
 0x1a1   :  { %v5522_v0 = vpop.eup %5521  ;;  %v1829_v29 = vadd.f32 1.0, %v5520_v3  ;;  %v1832_v37 = vmul.f32 -0.5, %v5520_v3  ;;  %v1835_v60 = vand.u32 2147483647, %v5520_v3 }
 0x1a2   :  { %v5524_v31 = vpop.eup %5523  ;;  %5525 = vlog2.f32 %v1820_v19  ;;  %v1838_v33 = vadd.f32 1.0, %v5522_v0  ;;  %v1841_v39 = vmul.f32 -0.5, %v5522_v0  ;;  %v1824_v48 = vadd.f32 1.0, %v1823_v35 }
 0x1a3   :  { %5527 = vlog2.f32 %v1829_v29  ;;  %v1847_v34 = vadd.f32 1.0, %v5524_v31  ;;  %v1850_v44 = vmul.f32 -0.5, %v5524_v31  ;;  %v1833_v56 = vadd.f32 1.0, %v1832_v37 }
 0x1a4   :  { %5529 = vlog2.f32 %v1838_v33  ;;  %v1842_v62 = vadd.f32 1.0, %v1841_v39  ;;  %v1844_v13 = vand.u32 2147483647, %v5522_v0  ;;  %v1825_v2 = vmul.f32 %v5518_v16, %v1824_v48 }
 0x1a5   :  { %5531 = vlog2.f32 %v1847_v34  ;;  %v1851_v4 = vadd.f32 1.0, %v1850_v44  ;;  %vm1827_vm11 = vcmp.lt.f32.partialorder %v1826_v54, 0.0004427343  ;;  %v1834_v34 = vmul.f32 %v5520_v3, %v1833_v56 }
 0x1a6   :  { %v1853_v17 = vand.u32 2147483647, %v5524_v31  ;;  %vm1836_vm1 = vcmp.lt.f32.partialorder %v1835_v60, 0.0004427343  ;;  %v1843_v37 = vmul.f32 %v5522_v0, %v1842_v62  ;;  %vm1845_vm2 = vcmp.lt.f32.partialorder %v1844_v13, 0.0004427343 }
 0x1a7   :  { %v1852_v44 = vmul.f32 %v5524_v31, %v1851_v4 }
 0x1a8   :  { %vm1854_vm7 = vcmp.lt.f32.partialorder %v1853_v17, 0.0004427343 }
 0x1ac   :  { %v5526_v5 = vpop.eup %5525 }
 0x1ad   :  { %v5528_v12 = vpop.eup %5527  ;;  %v1822_v19 = vmul.f32 0.6931472, %v5526_v5 }
 0x1ae   :  { %v5530_v29 = vpop.eup %5529  ;;  %v1831_v33 = vmul.f32 0.6931472, %v5528_v12 }
 0x1af   :  { %v1828_v21 = vsel %vm1827_vm11, %v1825_v2, %v1822_v19  ;;  %v1840_v35 = vmul.f32 0.6931472, %v5530_v29  ;;  %v5532_v59 = vpop.eup %5531  ;;  %vm1807_vm11 = vcmp.gt.f32.partialorder %v6189_v58, 20.0 }
 0x1b0   :  { %v1856_v39 = vsel %vm1804_vm15, %v1724_v42, %v1828_v21  ;;  %v1837_v43 = vsel %vm1836_vm1, %v1834_v34, %v1831_v33  ;;  %v1849_v5 = vmul.f32 0.6931472, %v5532_v59  ;;  %vm6809_vm15 = vcmp.ge.s32.totalorder %v5742_v8, 2 }
 0x1b1   :  { %v1865_v1 = vmul.f32 %v1856_v39, %v1856_v39  ;;  %v1857_v16 = vsel %vm1805_vm12, %v1726_v46, %v1837_v43  ;;  %v1846_v48 = vsel %vm1845_vm2, %v1843_v37, %v1840_v35  ;;  %vm6814_vm2 = vcmp.lt.s32.totalorder %v5742_v8, 14 }
 0x1b2   :  { %v1866_v36 = vmul.f32 %v1857_v16, %v1857_v16  ;;  %v1858_v12 = vsel %vm1806_vm3, %v1795_v49, %v1846_v48  ;;  %v1860_v3 = vadd.f32 %v1857_v16, %v1856_v39  ;;  %v1855_v2 = vsel %vm1854_vm7, %v1852_v44, %v1849_v5 }
 0x1b3   :  { %v1867_v0 = vmul.f32 %v1858_v12, %v1858_v12  ;;  %v1859_v54 = vsel %vm1807_vm11, %v6189_v58, %v1855_v2  ;;  %vm6810_vm7 = vcmp.ge.s32.totalorder %v5737_v6, 2  ;;  %vm1939_vm3 = vcmp.lt.s32.totalorder %v5750_v11, 32 }
 0x1b4   :  { %v1861_v21 = vadd.f32 %v1860_v3, %v1858_v12  ;;  %v1869_v42 = vadd.f32 %v1866_v36, %v1865_v1  ;;  %v1868_v4 = vmul.f32 %v1859_v54, %v1859_v54  ;;  %vm1904_vm12 = vmand %vm6810_vm7, %vm6809_vm15 }
 0x1b6   :  { %v1862_v56 = vadd.f32 %v1861_v21, %v1859_v54  ;;  %v1870_v31 = vadd.f32 %v1869_v42, %v1867_v0 }
 0x1b8   :  { %1863 = vadd.xlane.f32.xlu0 %v1862_v56  ;;  %v1871_v43 = vadd.f32 %v1870_v31, %v1868_v4  ;;  %v5284_v31 = vld [vmem:[%s6762_s4 + $0x8] sm:$0xff] }
 0x1ba   :  { %1872 = vadd.xlane.f32.xlu1 %v1871_v43 }
 0x245   :  { %v1864_v59 = vpop.xlane.xlu0 %1863 }
 0x246   :  { %v1874_v46 = vmul.f32 0.001953125, %v1864_v59 }
 0x247   :  { %v1873_v60 = vpop.xlane.xlu1 %1872 }
 0x248   :  { %v1875_v49 = vmul.f32 0.001953125, %v1873_v60  ;;  %v1876_v17 = vmul.f32 %v1874_v46, %v1874_v46  ;;  %v1879_v29 = vsub.f32 %v1856_v39, %v1874_v46  ;;  %v1880_v33 = vsub.f32 %v1857_v16, %v1874_v46 }
 0x249   :  { %v1881_v36 = vsub.f32 %v1858_v12, %v1874_v46  ;;  %v1882_v35 = vsub.f32 %v1859_v54, %v1874_v46  ;;  %v6932_v39 = vmov 0  }
 0x24a   :  { %v1877_v62 = vsub.f32 %v1875_v49, %v1876_v17  ;;  %v1944_v16 = vsel %vm6810_vm7, 1, %v6932_v39  ;;  %v1905_v54 = vsel %vm1904_vm12, 1, %v6932_v39  ;;  %vm1971_vm7 = vcmask 64512  }
 0x24b   :  { %v1952_v48 = vrot.slane %v1944_v16, %v5745_v9  ;;  %v1948_v5 = vrot.slane %v1944_v16, %v5747_v10  ;;  %v1960_v12 = vrot.slane %v1944_v16, %v5755_v14  ;;  %v1956_v0 = vrot.slane %v1944_v16, %v5757_v15 }
 0x24c   :  { %v1878_v13 = vmax.f32 %v1877_v62, 0.0  ;;  %v1913_v42 = vrot.slane %v1905_v54, %v5745_v9  ;;  %vm6933_vm12 = vcmp.ge.s32.totalorder %v5737_v6, 2  ;;  %v1909_v60 = vrot.slane %v1905_v54, %v5747_v10 }
 0x24d   :  { %vm1962_vm1 = vcmp.eq.s32.totalorder %v1952_v48, 1  ;;  %vm1961_vm11 = vcmp.eq.s32.totalorder %v1948_v5, 1  ;;  %vm1964_vm15 = vcmp.eq.s32.totalorder %v1960_v12, 1  ;;  %vm1963_vm0 = vcmp.eq.s32.totalorder %v1956_v0, 1 }
 0x24e   :  { %v1883_v19 = vadd.f32 1e-05, %v1878_v13  ;;  %vm1923_vm10 = vcmp.eq.s32.totalorder %v1913_v42, 1  ;;  %v1921_v49 = vrot.slane %v1905_v54, %v5755_v14  ;;  %v6934_v13 = vmov 0.0  }
 0x24f   :  { %v1917_v6 = vrot.slane %v1905_v54, %v5757_v15 }
 0x250   :  { %5533 = vrsqrt.f32 %v1883_v19 }
 0x25a   :  { %v5534_v58 = vpop.eup %5533 }
 0x25b   :  { %v6197_v34 = vmul.f32 %v5534_v58, %v1879_v29  ;;  %v6199_v1 = vmul.f32 %v5534_v58, %v1880_v33  ;;  %v6203_v37 = vmul.f32 %v5534_v58, %v1881_v36  ;;  %v6205_v44 = vmul.f32 %v5534_v58, %v1882_v35  ;;  %v1930_v35 = vld [vmem:[%s6762_s4] sm:$0xff] }
 0x25d   :  { %1933 = vrot.lane.b32.xlu1 %v6199_v1, %s5606_s3  ;;  %1931 = vrot.lane.b32.xlu0 %v6197_v34, %s5606_s3 }
 0x261   :  { %1935 = vrot.lane.b32.xlu1 %v6203_v37, %s5606_s3  ;;  %1937 = vrot.lane.b32.xlu0 %v6205_v44, %s5606_s3 }
 0x265   :  { %1891 = vrot.lane.b32.xlu1 %v6199_v1, %s5607_s2  ;;  %1889 = vrot.lane.b32.xlu0 %v6197_v34, %s5607_s2 }
 0x269   :  { %1893 = vrot.lane.b32.xlu1 %v6203_v37, %s5607_s2  ;;  %1895 = vrot.lane.b32.xlu0 %v6205_v44, %s5607_s2 }
 0x26d   :  { %2264 = vrot.lane.b32.xlu1 %v6199_v1, %s5608_s12  ;;  %2262 = vrot.lane.b32.xlu0 %v6197_v34, %s5608_s12 }
 0x271   :  { %2266 = vrot.lane.b32.xlu1 %v6203_v37, %s5608_s12  ;;  %2268 = vrot.lane.b32.xlu0 %v6205_v44, %s5608_s12 }
 0x275   :  { %2455 = vrot.lane.b32.xlu1 %v6199_v1, %s5609_s13  ;;  %2453 = vrot.lane.b32.xlu0 %v6197_v34, %s5609_s13 }
 0x279   :  { %2457 = vrot.lane.b32.xlu1 %v6203_v37, %s5609_s13  ;;  %2459 = vrot.lane.b32.xlu0 %v6205_v44, %s5609_s13 }
 0x27d   :  { %2797 = vrot.lane.b32.xlu1 %v6203_v37, %s5610_s14  ;;  %2795 = vrot.lane.b32.xlu0 %v6199_v1, %s5610_s14 }
 0x281   :  { %2799 = vrot.lane.b32.xlu1 %v6205_v44, %s5610_s14  ;;  %2793 = vrot.lane.b32.xlu0 %v6197_v34, %s5610_s14 }
 0x285   :  { %2986 = vrot.lane.b32.xlu1 %v6203_v37, %s5611_s15  ;;  %2984 = vrot.lane.b32.xlu0 %v6199_v1, %s5611_s15 }
 0x289   :  { %2988 = vrot.lane.b32.xlu1 %v6205_v44, %s5611_s15  ;;  %2982 = vrot.lane.b32.xlu0 %v6197_v34, %s5611_s15 }
 0x28d   :  { %3177 = vrot.lane.b32.xlu1 %v6203_v37, %s5612_s16  ;;  %3175 = vrot.lane.b32.xlu0 %v6199_v1, %s5612_s16 }
 0x291   :  { %3179 = vrot.lane.b32.xlu1 %v6205_v44, %s5612_s16  ;;  %3173 = vrot.lane.b32.xlu0 %v6197_v34, %s5612_s16 }
 0x295   :  { %3366 = vrot.lane.b32.xlu1 %v6203_v37, %s5613_s17  ;;  %3364 = vrot.lane.b32.xlu0 %v6199_v1, %s5613_s17 }
 0x299   :  { %3368 = vrot.lane.b32.xlu1 %v6205_v44, %s5613_s17  ;;  %3362 = vrot.lane.b32.xlu0 %v6197_v34, %s5613_s17 }
 0x2cf   :  { %v1934_v3 = vpop.permute.xlu1 %1933  ;;  %v1932_v2 = vpop.permute.xlu0 %1931 }
 0x2d0   :  { %v1942_v21 = vsel %vm1939_vm3, %v1932_v2, %v1934_v3 }
 0x2d1   :  { %5285 = vmatprep.subr.msk.mxu0 %vm1962_vm1, %v1942_v21  ;;  %vm2276_vm1 = vmand %vm6933_vm12, %vm6814_vm2 }
 0x2d2   :  { %v2277_v19 = vsel %vm2276_vm1, 1, %v6932_v39 }
 0x2d3   :  { %v1936_v56 = vpop.permute.xlu1 %1935  ;;  %v1938_v4 = vpop.permute.xlu0 %1937  ;;  %v2285_v33 = vrot.slane %v2277_v19, %v5745_v9  ;;  %v2281_v12 = vrot.slane %v2277_v19, %v5747_v10  ;;  %v2289_v54 = vrot.slane %v2277_v19, %v5757_v15 }
 0x2d4   :  { %v1941_v43 = vsel %vm1939_vm3, %v1934_v3, %v1936_v56  ;;  %v1940_v59 = vsel %vm1939_vm3, %v1936_v56, %v1938_v4  ;;  %v1943_v46 = vsel %vm1939_vm3, %v1938_v4, %v1932_v2  ;;  %vm1924_vm3 = vcmp.eq.s32.totalorder %v1917_v6, 1 }
 0x2d5   :  { %5286 = vmatpush1.msk.msra.mxu0 %vm1961_vm11, %v1943_v46  ;;  %5288 = vmatprep.subr.msk.mxu1 %vm1964_vm15, %v1940_v59  ;;  %vm1925_vm15 = vcmp.eq.s32.totalorder %v1921_v49, 1  ;;  %vm2295_vm11 = vcmp.eq.s32.totalorder %v2285_v33, 1  ;;  %v2293_v3 = vrot.slane %v2277_v19, %v5755_v14  ;;  %vm2294_vm12 = vcmp.eq.s32.totalorder %v2281_v12, 1 }
 0x2d6   :  { %5287 = vmatmul.mubr.msk.f32.vlgmr.msra.gmra.mrb[2].mxu0 %vm1971_vm7, %v5284_v31  ;;  %5289 = vmatpush1.msk.msra.mxu1 %vm1963_vm0, %v1941_v43  ;;  %vm1922_vm0 = vcmp.eq.s32.totalorder %v1909_v60, 1  ;;  %v5297_v43 = vld [vmem:[%s6762_s4 + $0x10] sm:$0xff] }
 0x2d7   :  { %v1892_v17 = vpop.permute.xlu1 %1891  ;;  %5290 = vmatmul.mubr.msk.f32.vlgmr.msra.gmra.mrb[2].mxu1 %vm1971_vm7, %v5284_v31  ;;  %v1890_v62 = vpop.permute.xlu0 %1889  ;;  %2184 = vmatprep.mubr.f32.mxu0 %v6934_v13  ;;  %vm2297_vm1 = vcmp.eq.s32.totalorder %v2293_v3, 1 }
 0x2d8   :  { %v1900_v29 = vsel %vm1897_vm5, %v1890_v62, %v1892_v17  ;;  %2255 = vmatprep.mubr.f32.mxu1 %v6934_v13 }
 0x2d9   :  { %5291 = vmatprep.subr.msk.mxu0 %vm1923_vm10, %v1900_v29  ;;  %vm2270_vm10 = vcmp.lt.s32.totalorder %v5750_v11, 30  ;;  %v2806_v29 = vsel %vm6814_vm2, 1, %v6932_v39 }
 0x2db   :  { %v1894_v58 = vpop.permute.xlu1 %1893  ;;  %v1896_v36 = vpop.permute.xlu0 %1895 }
 0x2dc   :  { %v1899_v16 = vsel %vm1897_vm5, %v1892_v17, %v1894_v58  ;;  %v1898_v48 = vsel %vm1897_vm5, %v1894_v58, %v1896_v36  ;;  %v1901_v5 = vsel %vm1897_vm5, %v1896_v36, %v1890_v62  ;;  %vm6935_vm5 = vcmp.ge.s32.totalorder %v5742_v8, 2  ;;  %v6329_v58 = vld [vmem:[%s6759_s1] sm:$0xf] }
 0x2dd   :  { %5292 = vmatpush1.msk.msra.mxu0 %vm1922_vm0, %v1901_v5  ;;  %5294 = vmatprep.subr.msk.mxu1 %vm1925_vm15, %v1898_v48  ;;  %v2466_v21 = vsel %vm6935_vm5, 1, %v6932_v39  ;;  %vm2296_vm0 = vcmp.eq.s32.totalorder %v2289_v54, 1  ;;  %vm2461_vm15 = vcmp.lt.s32.totalorder %v5750_v11, 2  ;;  %v2814_v36 = vrot.slane %v2806_v29, %v5745_v9  ;;  %v5304_v48 = vld [vmem:[%s6762_s4 + $0x18] sm:$0xff] }
 0x2de   :  { %5293 = vmatmul.mubr.msk.f32.vlgmr.msra.gmra.mrb[2].mxu0 %vm1971_vm7, %v1930_v35  ;;  %5295 = vmatpush1.msk.msra.mxu1 %vm1924_vm3, %v1899_v16  ;;  %v2474_v56 = vrot.slane %v2466_v21, %v5745_v9  ;;  %v2470_v49 = vrot.slane %v2466_v21, %v5747_v10  ;;  %v2482_v17 = vrot.slane %v2466_v21, %v5755_v14 }
 0x2df   :  { %v2265_v2 = vpop.permute.xlu1 %2264  ;;  %5296 = vmatmul.mubr.msk.f32.vlgmr.msra.gmra.mrb[2].mxu1 %vm1971_vm7, %v1930_v35  ;;  %v2263_v0 = vpop.permute.xlu0 %2262  ;;  %2371 = vmatprep.mubr.f32.mxu0 %v6934_v13  ;;  %v2478_v19 = vrot.slane %v2466_v21, %v5757_v15  ;;  %vm2824_vm2 = vcmp.eq.s32.totalorder %v2814_v36, 1 }
 0x2e0   :  { %v2273_v42 = vsel %vm2270_vm10, %v2263_v0, %v2265_v2  ;;  %2442 = vmatprep.mubr.f32.mxu1 %v6934_v13  ;;  %vm2484_vm3 = vcmp.eq.s32.totalorder %v2474_v56, 1  ;;  %vm2486_vm5 = vcmp.eq.s32.totalorder %v2482_v17, 1  ;;  %v2810_v56 = vrot.slane %v2806_v29, %v5747_v10 }
 0x2e1   :  { %5298 = vmatprep.subr.msk.mxu0 %vm2295_vm11, %v2273_v42  ;;  %vm2483_vm11 = vcmp.eq.s32.totalorder %v2470_v49, 1 }
 0x2e3   :  { %v2267_v4 = vpop.permute.xlu1 %2266  ;;  %v2269_v31 = vpop.permute.xlu0 %2268 }
 0x2e4   :  { %v2272_v59 = vsel %vm2270_vm10, %v2265_v2, %v2267_v4  ;;  %v2271_v46 = vsel %vm2270_vm10, %v2267_v4, %v2269_v31  ;;  %v2274_v60 = vsel %vm2270_vm10, %v2269_v31, %v2263_v0  ;;  %vm2995_vm10 = vcmp.lt.s32.totalorder %v6329_v58, 14 }
 0x2e5   :  { %5299 = vmatpush1.msk.msra.mxu0 %vm2294_vm12, %v2274_v60  ;;  %5301 = vmatprep.subr.msk.mxu1 %vm2297_vm1, %v2271_v46  ;;  %vm2485_vm12 = vcmp.eq.s32.totalorder %v2478_v19, 1  ;;  %vm6936_vm1 = vcmp.ge.s32.totalorder %v5742_v8, 2  ;;  %v2822_v2 = vrot.slane %v2806_v29, %v5755_v14  ;;  %v2818_v4 = vrot.slane %v2806_v29, %v5757_v15  ;;  %v5311_v46 = vld [vmem:[%s6762_s4 + $0x20] sm:$0xff] }
 0x2e6   :  { %5300 = vmatmul.mubr.msk.f32.vlgmr.msra.gmra.mrb[2].mxu0 %vm1971_vm7, %v5297_v43  ;;  %5302 = vmatpush1.msk.msra.mxu1 %vm2296_vm0, %v2272_v59  ;;  %vm2996_vm0 = vmand %vm2995_vm10, %vm6936_vm1  ;;  %v3186_v29 = vsel %vm2995_vm10, 1, %v6932_v39 }
 0x2e7   :  { %v2456_v62 = vpop.permute.xlu1 %2455  ;;  %5303 = vmatmul.mubr.msk.f32.vlgmr.msra.gmra.mrb[2].mxu1 %vm1971_vm7, %v5297_v43  ;;  %v2454_v6 = vpop.permute.xlu0 %2453  ;;  %2560 = vmatprep.mubr.f32.mxu0 %v6934_v13  ;;  %v2997_v21 = vsel %vm2996_vm0, 1, %v6932_v39 }
 0x2e8   :  { %v2464_v33 = vsel %vm2461_vm15, %v2454_v6, %v2456_v62  ;;  %2631 = vmatprep.mubr.f32.mxu1 %v6934_v13  ;;  %v3005_v31 = vrot.slane %v2997_v21, %v5745_v9  ;;  %v3013_v17 = vrot.slane %v2997_v21, %v5755_v14  ;;  %v3001_v36 = vrot.slane %v2997_v21, %v5747_v10 }
 0x2e9   :  { %5305 = vmatprep.subr.msk.mxu0 %vm2484_vm3, %v2464_v33  ;;  %vm2801_vm3 = vcmp.lt.s32.totalorder %v5750_v11, 126 }
 0x2ea   :  { %vm3017_vm1 = vcmp.eq.s32.totalorder %v3013_v17, 1  ;;  %vm3014_vm0 = vcmp.eq.s32.totalorder %v3001_v36, 1  ;;  %v5328_v36 = vld [vmem:[%s6762_s4 + $0x38] sm:$0xff] }
 0x2eb   :  { %v2458_v35 = vpop.permute.xlu1 %2457  ;;  %v2460_v16 = vpop.permute.xlu0 %2459 }
 0x2ec   :  { %v2463_v5 = vsel %vm2461_vm15, %v2456_v62, %v2458_v35  ;;  %v2462_v12 = vsel %vm2461_vm15, %v2458_v35, %v2460_v16  ;;  %v2465_v3 = vsel %vm2461_vm15, %v2460_v16, %v2454_v6  ;;  %vm2826_vm15 = vcmp.eq.s32.totalorder %v2822_v2, 1 }
 0x2ed   :  { %5306 = vmatpush1.msk.msra.mxu0 %vm2483_vm11, %v2465_v3  ;;  %5308 = vmatprep.subr.msk.mxu1 %vm2486_vm5, %v2462_v12  ;;  %vm2825_vm11 = vcmp.eq.s32.totalorder %v2818_v4, 1  ;;  %vm2990_vm5 = vcmp.lt.s32.totalorder %v5750_v11, 98  ;;  %v3009_v35 = vrot.slane %v2997_v21, %v5757_v15  ;;  %v3194_v16 = vrot.slane %v3186_v29, %v5745_v9  ;;  %v5314_v12 = vld [vmem:[%s6762_s4 + $0x28] sm:$0xff] }
 0x2ee   :  { %5307 = vmatmul.mubr.msk.f32.vlgmr.msra.gmra.mrb[2].mxu0 %vm1971_vm7, %v5304_v48  ;;  %5309 = vmatpush1.msk.msra.mxu1 %vm2485_vm12, %v2463_v5  ;;  %vm3015_vm12 = vcmp.eq.s32.totalorder %v3005_v31, 1  ;;  %v3198_v4 = vrot.slane %v3186_v29, %v5757_v15 }
 0x2ef   :  { %2647 = vmatprep.subr.mxu0 %v6199_v1  ;;  %v2798_v0 = vpop.permute.xlu1 %2797  ;;  %5310 = vmatmul.mubr.msk.f32.vlgmr.msra.gmra.mrb[2].mxu1 %vm1971_vm7, %v5304_v48  ;;  %v2796_v54 = vpop.permute.xlu0 %2795 }
 0x2f0   :  { %2648 = vmatpush1.msra.mxu0 %v6197_v34  ;;  %2718 = vmatprep.subr.mxu1 %v6205_v44  ;;  %v2803_v42 = vsel %vm2801_vm3, %v2796_v54, %v2798_v0 }
 0x2f1   :  { %2719 = vmatpush1.msra.mxu1 %v6203_v37  ;;  %5315 = vmatprep.subr.msk.mxu0 %vm2824_vm2, %v2803_v42  ;;  %vm2823_vm2 = vcmp.eq.s32.totalorder %v2810_v56, 1  ;;  %v3190_v56 = vrot.slane %v3186_v29, %v5747_v10 }
 0x2f2   :  { %2711 = vmatprep.mubr.f32.mxu0 %v6934_v13  ;;  %2782 = vmatprep.mubr.f32.mxu1 %v6934_v13 }
 0x2f3   :  { %v2800_v43 = vpop.permute.xlu1 %2799  ;;  %v2794_v59 = vpop.permute.xlu0 %2793 }
 0x2f4   :  { %v2804_v60 = vsel %vm2801_vm3, %v2794_v59, %v2796_v54  ;;  %v2805_v49 = vsel %vm2801_vm3, %v2800_v43, %v2794_v59  ;;  %v2802_v62 = vsel %vm2801_vm3, %v2798_v0, %v2800_v43  ;;  %vm6937_vm3 = vcmp.lt.s32.totalorder %v5742_v8, 14 }
 0x2f5   :  { %5318 = vmatprep.subr.msk.mxu1 %vm2826_vm15, %v2805_v49  ;;  %vm3375_vm15 = vmand %vm2995_vm10, %vm6937_vm3  ;;  %v3202_v0 = vrot.slane %v3186_v29, %v5755_v14 }
 0x2f6   :  { %5312 = vmatmul.mubr.msk.f32.vlgmr.msra.gmra.mrb[2].mxu0 %vm1971_vm7, %v5311_v46  ;;  %v3376_v58 = vsel %vm3375_vm15, 1, %v6932_v39  ;;  %v5321_v39 = vld [vmem:[%s6762_s4 + $0x30] sm:$0xff] }
 0x2f7   :  { %5316 = vmatpush1.msk.msra.mxu0 %vm2823_vm2, %v2804_v60  ;;  %v2987_v6 = vpop.permute.xlu1 %2986  ;;  %5313 = vmatmul.mubr.msk.f32.vlgmr.msra.gmra.mrb[2].mxu1 %vm1971_vm7, %v5311_v46  ;;  %v2985_v19 = vpop.permute.xlu0 %2984  ;;  %vm3016_vm2 = vcmp.eq.s32.totalorder %v3009_v35, 1  ;;  %vm3206_vm10 = vcmp.eq.s32.totalorder %v3202_v0, 1  ;;  %v3384_v31 = vrot.slane %v3376_v58, %v5745_v9  ;;  %v3392_v9 = vrot.slane %v3376_v58, %v5755_v14 }
 0x2f8   :  { %5319 = vmatpush1.msk.msra.mxu1 %vm2825_vm11, %v2802_v62  ;;  %v2992_v33 = vsel %vm2990_vm5, %v2985_v19, %v2987_v6  ;;  %2900 = vmatprep.mubr.f32.mxu0 %v6934_v13  ;;  %vm3181_vm11 = vcmp.lt.s32.totalorder %v5750_v11, 96  ;;  %v3388_v14 = vrot.slane %v3376_v58, %v5757_v15  ;;  %v5335_v15 = vld [vmem:[%s6762_s4 + $0x40] sm:$0xff] }
 0x2f9   :  { %5322 = vmatprep.subr.msk.mxu0 %vm3015_vm12, %v2992_v33  ;;  %2971 = vmatprep.mubr.f32.mxu1 %v6934_v13  ;;  %vm3204_vm12 = vcmp.eq.s32.totalorder %v3194_v16, 1  ;;  %vm3394_vm3 = vcmp.eq.s32.totalorder %v3384_v31, 1  ;;  %vm3396_vm15 = vcmp.eq.s32.totalorder %v3392_v9, 1 }
 0x2fb   :  { %v2989_v48 = vpop.permute.xlu1 %2988  ;;  %v2983_v5 = vpop.permute.xlu0 %2982 }
 0x2fc   :  { %v2993_v3 = vsel %vm2990_vm5, %v2983_v5, %v2985_v19  ;;  %v2994_v2 = vsel %vm2990_vm5, %v2989_v48, %v2983_v5  ;;  %v2991_v54 = vsel %vm2990_vm5, %v2987_v6, %v2989_v48  ;;  %vm3203_vm5 = vcmp.eq.s32.totalorder %v3190_v56, 1 }
 0x2fd   :  { %5325 = vmatprep.subr.msk.mxu1 %vm3017_vm1, %v2994_v2  ;;  %vm3205_vm1 = vcmp.eq.s32.totalorder %v3198_v4, 1  ;;  %v3380_v19 = vrot.slane %v3376_v58, %v5747_v10 }
 0x2fe   :  { %5317 = vmatmul.mubr.msk.f32.vlgmr.msra.gmra.mrb[2].mxu0 %vm1971_vm7, %v5314_v12 }
 0x2ff   :  { %5323 = vmatpush1.msk.msra.mxu0 %vm3014_vm0, %v2993_v3  ;;  %v3178_v21 = vpop.permute.xlu1 %3177  ;;  %5320 = vmatmul.mubr.msk.f32.vlgmr.msra.gmra.mrb[2].mxu1 %vm1971_vm7, %v5314_v12  ;;  %v3176_v8 = vpop.permute.xlu0 %3175  ;;  %vm3370_vm0 = vcmp.lt.s32.totalorder %v5750_v11, 94 }
 0x300   :  { %5326 = vmatpush1.msk.msra.mxu1 %vm3016_vm2, %v2991_v54  ;;  %v3183_v42 = vsel %vm3181_vm11, %v3176_v8, %v3178_v21  ;;  %3091 = vmatprep.mubr.f32.mxu0 %v6934_v13  ;;  %vm3393_vm2 = vcmp.eq.s32.totalorder %v3380_v19, 1 }
 0x301   :  { %5329 = vmatprep.subr.msk.mxu0 %vm3204_vm12, %v3183_v42  ;;  %3162 = vmatprep.mubr.f32.mxu1 %v6934_v13 }
 0x303   :  { %v3180_v43 = vpop.permute.xlu1 %3179  ;;  %v3174_v59 = vpop.permute.xlu0 %3173 }
 0x304   :  { %v3184_v46 = vsel %vm3181_vm11, %v3174_v59, %v3176_v8  ;;  %v3185_v60 = vsel %vm3181_vm11, %v3180_v43, %v3174_v59  ;;  %v3182_v49 = vsel %vm3181_vm11, %v3178_v21, %v3180_v43  ;;  %vm3395_vm11 = vcmp.eq.s32.totalorder %v3388_v14, 1 }
 0x305   :  { %5332 = vmatprep.subr.msk.mxu1 %vm3206_vm10, %v3185_v60 }
 0x306   :  { %5324 = vmatmul.mubr.msk.f32.vlgmr.msra.gmra.mrb[2].mxu0 %vm1971_vm7, %v5321_v39 }
 0x307   :  { %5330 = vmatpush1.msk.msra.mxu0 %vm3203_vm5, %v3184_v46  ;;  %v3367_v17 = vpop.permute.xlu1 %3366  ;;  %5327 = vmatmul.mubr.msk.f32.vlgmr.msra.gmra.mrb[2].mxu1 %vm1971_vm7, %v5321_v39  ;;  %v3365_v62 = vpop.permute.xlu0 %3364 }
 0x308   :  { %5333 = vmatpush1.msk.msra.mxu1 %vm3205_vm1, %v3182_v49  ;;  %v3372_v6 = vsel %vm3370_vm0, %v3365_v62, %v3367_v17  ;;  %3280 = vmatprep.mubr.f32.mxu0 %v6934_v13 }
 0x309   :  { %5336 = vmatprep.subr.msk.mxu0 %vm3394_vm3, %v3372_v6  ;;  %3351 = vmatprep.mubr.f32.mxu1 %v6934_v13 }
 0x30b   :  { %v3369_v29 = vpop.permute.xlu1 %3368  ;;  %v3363_v33 = vpop.permute.xlu0 %3362 }
 0x30c   :  { %v3373_v35 = vsel %vm3370_vm0, %v3363_v33, %v3365_v62  ;;  %v3374_v16 = vsel %vm3370_vm0, %v3369_v29, %v3363_v33  ;;  %v3371_v10 = vsel %vm3370_vm0, %v3367_v17, %v3369_v29 }
 0x30d   :  { %5339 = vmatprep.subr.msk.mxu1 %vm3396_vm15, %v3374_v16 }
 0x30e   :  { %5331 = vmatmul.mubr.msk.f32.vlgmr.msra.gmra.mrb[2].mxu0 %vm1971_vm7, %v5328_v36 }
 0x30f   :  { %5337 = vmatpush1.msk.msra.mxu0 %vm3393_vm2, %v3373_v35  ;;  %5334 = vmatmul.mubr.msk.f32.vlgmr.msra.gmra.mrb[2].mxu1 %vm1971_vm7, %v5328_v36 }
 0x310   :  { %5340 = vmatpush1.msk.msra.mxu1 %vm3395_vm11, %v3371_v10  ;;  %3470 = vmatprep.mubr.f32.mxu0 %v6934_v13  ;;  %vm6938_vm11 = vcmp.lt.s32.totalorder %v5750_v11, 16 }
 0x311   :  { %3541 = vmatprep.mubr.f32.mxu1 %v6934_v13 }
 0x316   :  { %5338 = vmatmul.mubr.msk.f32.vlgmr.msra.gmra.mrb[2].mxu0 %vm1971_vm7, %v5335_v15 }
 0x317   :  { %5341 = vmatmul.mubr.msk.f32.vlgmr.msra.gmra.mrb[2].mxu1 %vm1971_vm7, %v5335_v15  ;;  %3739 = vmatprep.mubr.f32.mxu0 %v6934_v13 }
 0x318   :  { %3810 = vmatprep.mubr.f32.mxu1 %v6934_v13 }
 0x3e9   :  { %v3472_v48 = vpop.f32.mrb[2].mxu0 }
 0x3ea   :  { %v3556_v5 = vmin.f32 %v3472_v48, 20.0  ;;  %v3474_v12 = vpop.f32.mrb[3].mxu0  ;;  %v6449_v3 = vpop.f32.mrb[2].mxu1  ;;  %vm3552_vm12 = vcmp.gt.f32.partialorder %v3472_v48, 20.0 }
 0x3eb   :  { %v3557_v2 = vmin.f32 %v3474_v12, 20.0  ;;  %v3558_v0 = vmin.f32 %v6449_v3, 20.0  ;;  %v6452_v54 = vpop.f32.mrb[3].mxu1  ;;  %vm3553_vm10 = vcmp.gt.f32.partialorder %v3474_v12, 20.0  ;;  %vm3554_vm5 = vcmp.gt.f32.partialorder %v6449_v3, 20.0 }
 0x3ec   :  { %v3560_v21 = vmul.f32 1.442695, %v3556_v5  ;;  %v3559_v8 = vmin.f32 %v6452_v54, 20.0  ;;  %vm3555_vm2 = vcmp.gt.f32.partialorder %v6452_v54, 20.0 }
 0x3ed   :  { %v3562_v58 = vmul.f32 1.442695, %v3557_v2  ;;  %v3564_v42 = vmul.f32 1.442695, %v3558_v0 }
 0x3ee   :  { %5535 = vpow2.f32 %v3560_v21  ;;  %v3566_v56 = vmul.f32 1.442695, %v3559_v8 }
 0x3ef   :  { %5537 = vpow2.f32 %v3562_v58 }
 0x3f0   :  { %5539 = vpow2.f32 %v3564_v42 }
 0x3f1   :  { %5541 = vpow2.f32 %v3566_v56 }
 0x3f8   :  { %v5536_v4 = vpop.eup %5535 }
 0x3f9   :  { %v5538_v31 = vpop.eup %5537  ;;  %v3568_v43 = vadd.f32 1.0, %v5536_v4  ;;  %v3571_v49 = vmul.f32 -0.5, %v5536_v4  ;;  %v3574_v14 = vand.u32 2147483647, %v5536_v4 }
 0x3fa   :  { %v5540_v59 = vpop.eup %5539  ;;  %v3577_v39 = vadd.f32 1.0, %v5538_v31  ;;  %v3580_v17 = vmul.f32 -0.5, %v5538_v31  ;;  %v3583_v33 = vand.u32 2147483647, %v5538_v31 }
 0x3fb   :  { %v5542_v46 = vpop.eup %5541  ;;  %5543 = vlog2.f32 %v3568_v43  ;;  %v3586_v60 = vadd.f32 1.0, %v5540_v59  ;;  %v3589_v62 = vmul.f32 -0.5, %v5540_v59  ;;  %v3572_v19 = vadd.f32 1.0, %v3571_v49 }
 0x3fc   :  { %5545 = vlog2.f32 %v3577_v39  ;;  %v3595_v9 = vadd.f32 1.0, %v5542_v46  ;;  %v3598_v6 = vmul.f32 -0.5, %v5542_v46  ;;  %v3581_v29 = vadd.f32 1.0, %v3580_v17 }
 0x3fd   :  { %5547 = vlog2.f32 %v3586_v60  ;;  %v3590_v36 = vadd.f32 1.0, %v3589_v62  ;;  %v3592_v16 = vand.u32 2147483647, %v5540_v59  ;;  %v3573_v2 = vmul.f32 %v5536_v4, %v3572_v19 }
 0x3fe   :  { %5549 = vlog2.f32 %v3595_v9  ;;  %v3599_v10 = vadd.f32 1.0, %v3598_v6  ;;  %vm3575_vm1 = vcmp.lt.f32.partialorder %v3574_v14, 0.0004427343  ;;  %v3582_v8 = vmul.f32 %v5538_v31, %v3581_v29 }
 0x3ff   :  { %v3601_v58 = vand.u32 2147483647, %v5542_v46  ;;  %vm3584_vm0 = vcmp.lt.f32.partialorder %v3583_v33, 0.0004427343  ;;  %v3591_v43 = vmul.f32 %v5540_v59, %v3590_v36  ;;  %vm3593_vm3 = vcmp.lt.f32.partialorder %v3592_v16, 0.0004427343 }
 0x400   :  { %v3600_v49 = vmul.f32 %v5542_v46, %v3599_v10 }
 0x401   :  { %vm3602_vm15 = vcmp.lt.f32.partialorder %v3601_v58, 0.0004427343 }
 0x405   :  { %v5544_v35 = vpop.eup %5543 }
 0x406   :  { %v5546_v15 = vpop.eup %5545  ;;  %v3570_v5 = vmul.f32 0.6931472, %v5544_v35 }
 0x407   :  { %v5548_v0 = vpop.eup %5547  ;;  %v3579_v21 = vmul.f32 0.6931472, %v5546_v15 }
 0x408   :  { %v3576_v42 = vsel %vm3575_vm1, %v3573_v2, %v3570_v5  ;;  %v3588_v56 = vmul.f32 0.6931472, %v5548_v0  ;;  %v5550_v39 = vpop.eup %5549  ;;  %vm6947_vm1 = vnez %v6828_v51  ;;  %v5355_v51 = vld [vmem:[%s6763_s5 + $0x10] sm:$0xff] }
 0x409   :  { %v3604_v60 = vsel %vm3552_vm12, %v3472_v48, %v3576_v42  ;;  %v3585_v9 = vsel %vm3584_vm0, %v3582_v8, %v3579_v21  ;;  %v3597_v6 = vmul.f32 0.6931472, %v5550_v39  ;;  %vm6939_vm12 = vmmov %vm6938_vm11  ;;  %vm6948_vm0 = vcmp.lt.s32.totalorder %v5750_v11, 15 }
 0x40a   :  { %v3613_v17 = vmul.f32 %v3604_v60, %v3604_v60  ;;  %v3605_v4 = vsel %vm3553_vm10, %v3474_v12, %v3585_v9  ;;  %v3594_v62 = vsel %vm3593_vm3, %v3591_v43, %v3588_v56  ;;  %vm6940_vm10 = vmmov %vm6938_vm11 }
 0x40b   :  { %v3614_v19 = vmul.f32 %v3605_v4, %v3605_v4  ;;  %v3606_v31 = vsel %vm3554_vm5, %v6449_v3, %v3594_v62  ;;  %v3608_v14 = vadd.f32 %v3605_v4, %v3604_v60  ;;  %v3603_v59 = vsel %vm3602_vm15, %v3600_v49, %v3597_v6  ;;  %vm6941_vm5 = vmmov %vm6940_vm10 }
 0x40c   :  { %v3607_v48 = vsel %vm3555_vm2, %v6452_v54, %v3603_v59  ;;  %v3615_v33 = vmul.f32 %v3606_v31, %v3606_v31  ;;  %vm6950_vm3 = vmmov %vm6948_vm0 }
 0x40d   :  { %v3609_v29 = vadd.f32 %v3608_v14, %v3606_v31  ;;  %v3617_v46 = vadd.f32 %v3614_v19, %v3613_v17  ;;  %v3616_v35 = vmul.f32 %v3607_v48, %v3607_v48  ;;  %vm6951_vm15 = vmmov %vm6948_vm0 }
 0x40e   :  { %vm6952_vm2 = vmmov %vm6948_vm0 }
 0x40f   :  { %v3610_v36 = vadd.f32 %v3609_v29, %v3607_v48  ;;  %v3618_v12 = vadd.f32 %v3617_v46, %v3615_v33 }
 0x411   :  { %3611 = vadd.xlane.f32.xlu0 %v3610_v36  ;;  %v3619_v16 = vadd.f32 %v3618_v12, %v3616_v35 }
 0x413   :  { %3620 = vadd.xlane.f32.xlu1 %v3619_v16 }
 0x49e   :  { %v3612_v10 = vpop.xlane.xlu0 %3611 }
 0x49f   :  { %v3622_v15 = vmul.f32 0.001953125, %v3612_v10 }
 0x4a0   :  { %v3621_v5 = vpop.xlane.xlu1 %3620 }
 0x4a1   :  { %v3623_v3 = vmul.f32 0.001953125, %v3621_v5  ;;  %v3624_v2 = vmul.f32 %v3622_v15, %v3622_v15  ;;  %v3627_v58 = vsub.f32 %v3604_v60, %v3622_v15  ;;  %v3628_v54 = vsub.f32 %v3605_v4, %v3622_v15 }
 0x4a2   :  { %v3629_v39 = vsub.f32 %v3606_v31, %v3622_v15  ;;  %v3630_v9 = vsub.f32 %v3607_v48, %v3622_v15  ;;  %v5342_v31 = vld [vmem:[%s6763_s5 + $0x8] sm:$0xff] }
 0x4a3   :  { %v3625_v0 = vsub.f32 %v3623_v3, %v3624_v2 }
 0x4a5   :  { %v3626_v21 = vmax.f32 %v3625_v0, 0.0 }
 0x4a7   :  { %v3631_v8 = vadd.f32 1e-05, %v3626_v21 }
 0x4a9   :  { %5551 = vrsqrt.f32 %v3631_v8 }
 0x4b3   :  { %v5552_v42 = vpop.eup %5551 }
 0x4b4   :  { %v6463_v56 = vmul.f32 %v5552_v42, %v3628_v54  ;;  %v6465_v43 = vmul.f32 %v5552_v42, %v3627_v58  ;;  %v6471_v49 = vmul.f32 %v5552_v42, %v3629_v39  ;;  %v6473_v17 = vmul.f32 %v5552_v42, %v3630_v9  ;;  %v5369_v54 = vld [vmem:[%s6763_s5 + $0x20] sm:$0xff] }
 0x4b6   :  { %3656 = vrot.lane.b32.xlu1 %v6463_v56, %s5596_s25  ;;  %3654 = vrot.lane.b32.xlu0 %v6465_v43, %s5596_s25 }
 0x4ba   :  { %3658 = vrot.lane.b32.xlu1 %v6471_v49, %s5596_s25  ;;  %3660 = vrot.lane.b32.xlu0 %v6473_v17, %s5596_s25 }
 0x4be   :  { %3639 = vrot.lane.b32.xlu1 %v6463_v56, %s5598_s0  ;;  %3637 = vrot.lane.b32.xlu0 %v6465_v43, %s5598_s0 }
 0x4c2   :  { %3641 = vrot.lane.b32.xlu1 %v6471_v49, %s5598_s0  ;;  %3643 = vrot.lane.b32.xlu0 %v6473_v17, %s5598_s0 }
 0x4c6   :  { %3964 = vrot.lane.b32.xlu1 %v6463_v56, %s5599_s26  ;;  %3962 = vrot.lane.b32.xlu0 %v6465_v43, %s5599_s26 }
 0x4ca   :  { %3966 = vrot.lane.b32.xlu1 %v6471_v49, %s5599_s26  ;;  %3968 = vrot.lane.b32.xlu0 %v6473_v17, %s5599_s26 }
 0x4ce   :  { %4131 = vrot.lane.b32.xlu1 %v6463_v56, %s5600_s27  ;;  %4129 = vrot.lane.b32.xlu0 %v6465_v43, %s5600_s27 }
 0x4d2   :  { %4133 = vrot.lane.b32.xlu1 %v6471_v49, %s5600_s27  ;;  %4135 = vrot.lane.b32.xlu0 %v6473_v17, %s5600_s27 }
 0x4d6   :  { %4451 = vrot.lane.b32.xlu1 %v6471_v49, %s5601_s28  ;;  %4449 = vrot.lane.b32.xlu0 %v6463_v56, %s5601_s28 }
 0x4da   :  { %4453 = vrot.lane.b32.xlu1 %v6473_v17, %s5601_s28  ;;  %4447 = vrot.lane.b32.xlu0 %v6465_v43, %s5601_s28 }
 0x4de   :  { %4618 = vrot.lane.b32.xlu1 %v6471_v49, %s5602_s29  ;;  %4616 = vrot.lane.b32.xlu0 %v6463_v56, %s5602_s29 }
 0x4e2   :  { %4620 = vrot.lane.b32.xlu1 %v6473_v17, %s5602_s29  ;;  %4614 = vrot.lane.b32.xlu0 %v6465_v43, %s5602_s29 }
 0x4e6   :  { %4785 = vrot.lane.b32.xlu1 %v6471_v49, %s5603_s30  ;;  %4783 = vrot.lane.b32.xlu0 %v6463_v56, %s5603_s30 }
 0x4ea   :  { %4787 = vrot.lane.b32.xlu1 %v6473_v17, %s5603_s30  ;;  %4781 = vrot.lane.b32.xlu0 %v6465_v43, %s5603_s30 }
 0x4ee   :  { %4952 = vrot.lane.b32.xlu1 %v6471_v49, %s5604_s7  ;;  %4950 = vrot.lane.b32.xlu0 %v6463_v56, %s5604_s7 }
 0x4f2   :  { %4954 = vrot.lane.b32.xlu1 %v6473_v17, %s5604_s7  ;;  %4948 = vrot.lane.b32.xlu0 %v6465_v43, %s5604_s7 }
 0x528   :  { %v3657_v60 = vpop.permute.xlu1 %3656  ;;  %v3655_v4 = vpop.permute.xlu0 %3654 }
 0x529   :  { %v3664_v62 = vsel %vm6938_vm11, %v3655_v4, %v3657_v60  ;;  %vm6953_vm11 = vnez %v6834_v18 }
 0x52a   :  { %5343 = vmatprep.subr.msk.mxu0 %vm5769_vm4, %v3664_v62  ;;  %vm6942_vm4 = vcmp.lt.s32.totalorder %v5750_v11, 17 }
 0x52c   :  { %v3659_v6 = vpop.permute.xlu1 %3658  ;;  %v3661_v19 = vpop.permute.xlu0 %3660 }
 0x52d   :  { %v3663_v14 = vsel %vm6939_vm12, %v3657_v60, %v3659_v6  ;;  %v3662_v59 = vsel %vm6940_vm10, %v3659_v6, %v3661_v19  ;;  %v3665_v48 = vsel %vm6941_vm5, %v3661_v19, %v3655_v4  ;;  %vm6954_vm12 = vnez %v6838_v24  ;;  %v5379_v6 = vld [vmem:[%s6763_s5 + $0x30] sm:$0xff] }
 0x52e   :  { %5344 = vmatpush1.msk.msra.mxu0 %vm5775_vm6, %v3665_v48  ;;  %5346 = vmatprep.subr.msk.mxu1 %vm5782_vm8, %v3662_v59  ;;  %vm6943_vm6 = vmmov %vm6942_vm4  ;;  %vm6955_vm10 = vnez %v6836_v22  ;;  %vm6956_vm5 = vcmp.lt.s32.totalorder %v5750_v11, 1  ;;  %v5362_v22 = vld [vmem:[%s6763_s5 + $0x18] sm:$0xff] }
 0x52f   :  { %5345 = vmatmul.mubr.msk.f32.vlgmr.msra.gmra.mrb[4].mxu0 %vm1971_vm7, %v5342_v31  ;;  %5347 = vmatpush1.msk.msra.mxu1 %vm5787_vm9, %v3663_v14  ;;  %vm6944_vm8 = vmmov %vm6942_vm4  ;;  %v6987_v14 = vld [vmem:[#allocation5_spill] sm:$0xff] }
 0x530   :  { %v3640_v23 = vpop.permute.xlu1 %3639  ;;  %5348 = vmatmul.mubr.msk.f32.vlgmr.msra.gmra.mrb[4].mxu1 %vm1971_vm7, %v5342_v31  ;;  %v3638_v29 = vpop.permute.xlu0 %3637  ;;  %3884 = vmatprep.mubr.f32.mxu0 %v6934_v13  ;;  %vm6945_vm9 = vmmov %vm6942_vm4  ;;  %v6984_v31 = vld [vmem:[#allocation6_spill] sm:$0xff] }
 0x531   :  { %v3647_v33 = vsel %vm6942_vm4, %v3638_v29, %v3640_v23  ;;  %3955 = vmatprep.mubr.f32.mxu1 %v6934_v13  ;;  %vm6957_vm4 = vnez %v6840_v38 }
 0x532   :  { %5349 = vmatprep.subr.msk.mxu0 %vm5816_vm13, %v3647_v33  ;;  %vm6946_vm13 = vnez %v6830_v52  ;;  %v6992_v33 = vld [vmem:[#allocation8_spill] sm:$0xff] }
 0x534   :  { %v3642_v26 = vpop.permute.xlu1 %3641  ;;  %v3644_v28 = vpop.permute.xlu0 %3643 }
 0x535   :  { %v3646_v46 = vsel %vm6943_vm6, %v3640_v23, %v3642_v26  ;;  %v3645_v36 = vsel %vm6944_vm8, %v3642_v26, %v3644_v28  ;;  %v3648_v35 = vsel %vm6945_vm9, %v3644_v28, %v3638_v29  ;;  %vm6958_vm6 = vmmov %vm6956_vm5  ;;  %v6989_v23 = vld [vmem:[#allocation7_spill] sm:$0xff] }
 0x536   :  { %5350 = vmatpush1.msk.msra.mxu0 %vm5828_vm14, %v3648_v35  ;;  %5352 = vmatprep.subr.msk.mxu1 %vm6946_vm13, %v3645_v36  ;;  %vm6949_vm14 = vnez %v6832_v63  ;;  %vm6959_vm8 = vmmov %vm6956_vm5  ;;  %vm6961_vm13 = vnez %v6843_v45  ;;  %v6996_v35 = vld [vmem:[#allocation10_spill] sm:$0xff] }
 0x537   :  { %5351 = vmatmul.mubr.msk.f32.vlgmr.msra.gmra.mrb[4].mxu0 %vm1971_vm7, %v3653_v30  ;;  %5353 = vmatpush1.msk.msra.mxu1 %vm6947_vm1, %v3646_v46  ;;  %vm6960_vm9 = vmmov %vm6956_vm5  ;;  %vm6962_vm1 = vnez %v6848_v53 }
 0x538   :  { %v3965_v41 = vpop.permute.xlu1 %3964  ;;  %5354 = vmatmul.mubr.msk.f32.vlgmr.msra.gmra.mrb[4].mxu1 %vm1971_vm7, %v3653_v30  ;;  %v3963_v12 = vpop.permute.xlu0 %3962  ;;  %4047 = vmatprep.mubr.f32.mxu0 %v6934_v13  ;;  %v5386_v30 = vld [vmem:[%s6763_s5 + $0x38] sm:$0xff] }
 0x539   :  { %v3972_v16 = vsel %vm6948_vm0, %v3963_v12, %v3965_v41  ;;  %4118 = vmatprep.mubr.f32.mxu1 %v6934_v13  ;;  %vm6963_vm0 = vnez %v6846_v50 }
 0x53a   :  { %5356 = vmatprep.subr.msk.mxu0 %vm6949_vm14, %v3972_v16  ;;  %vm6964_vm14 = vcmp.lt.s32.totalorder %v5750_v11, 127  ;;  %v7001_v16 = vld [vmem:[#allocation11_spill] sm:$0xff] }
 0x53c   :  { %v3967_v47 = vpop.permute.xlu1 %3966  ;;  %v3969_v52 = vpop.permute.xlu0 %3968 }
 0x53d   :  { %v3971_v10 = vsel %vm6950_vm3, %v3965_v41, %v3967_v47  ;;  %v3970_v15 = vsel %vm6951_vm15, %v3967_v47, %v3969_v52  ;;  %v3973_v5 = vsel %vm6952_vm2, %v3969_v52, %v3963_v12  ;;  %vm6965_vm3 = vnez %v6855_v7  ;;  %vm6966_vm15 = vmmov %vm6964_vm14  ;;  %v6999_v12 = vld [vmem:[#allocation9_spill] sm:$0xff] }
 0x53e   :  { %5357 = vmatpush1.msk.msra.mxu0 %vm6953_vm11, %v3973_v5  ;;  %5359 = vmatprep.subr.msk.mxu1 %vm6954_vm12, %v3970_v15  ;;  %vm6967_vm2 = vmmov %vm6964_vm14  ;;  %vm6968_vm11 = vnez %v6863_v27  ;;  %v5393_v47 = vld [vmem:[%s6763_s5 + $0x40] sm:$0xff] }
 0x53f   :  { %5358 = vmatmul.mubr.msk.f32.vlgmr.msra.gmra.mrb[4].mxu0 %vm1971_vm7, %v5355_v51  ;;  %5360 = vmatpush1.msk.msra.mxu1 %vm6955_vm10, %v3971_v10  ;;  %vm6969_vm12 = vmmov %vm6967_vm2  ;;  %vm6970_vm10 = vnez %v6860_v25 }
 0x540   :  { %v4132_v63 = vpop.permute.xlu1 %4131  ;;  %5361 = vmatmul.mubr.msk.f32.vlgmr.msra.gmra.mrb[4].mxu1 %vm1971_vm7, %v5355_v51  ;;  %v4130_v3 = vpop.permute.xlu0 %4129  ;;  %4214 = vmatprep.mubr.f32.mxu0 %v6934_v13 }
 0x541   :  { %v4139_v2 = vsel %vm6956_vm5, %v4130_v3, %v4132_v63  ;;  %4285 = vmatprep.mubr.f32.mxu1 %v6934_v13  ;;  %vm6971_vm5 = vnez %v6867_v32 }
 0x542   :  { %5363 = vmatprep.subr.msk.mxu0 %vm6957_vm4, %v4139_v2  ;;  %vm6972_vm4 = vcmp.lt.s32.totalorder %v5750_v11, 113 }
 0x544   :  { %v4134_v18 = vpop.permute.xlu1 %4133  ;;  %v4136_v24 = vpop.permute.xlu0 %4135 }
 0x545   :  { %v4138_v0 = vsel %vm6958_vm6, %v4132_v63, %v4134_v18  ;;  %v4137_v21 = vsel %vm6959_vm8, %v4134_v18, %v4136_v24  ;;  %v4140_v8 = vsel %vm6960_vm9, %v4136_v24, %v4130_v3  ;;  %vm6973_vm6 = vnez %v6871_v40  ;;  %vm6974_vm8 = vmmov %vm6972_vm4 }
 0x546   :  { %5364 = vmatpush1.msk.msra.mxu0 %vm6961_vm13, %v4140_v8  ;;  %5366 = vmatprep.subr.msk.mxu1 %vm6962_vm1, %v4137_v21  ;;  %vm6975_vm9 = vmmov %vm6972_vm4  ;;  %vm6976_vm13 = vnez %v6881_v57 }
 0x547   :  { %5365 = vmatmul.mubr.msk.f32.vlgmr.msra.gmra.mrb[4].mxu0 %vm1971_vm7, %v5362_v22  ;;  %5367 = vmatpush1.msk.msra.mxu1 %vm6963_vm0, %v4138_v0  ;;  %vm6977_vm1 = vmmov %vm6972_vm4  ;;  %vm6978_vm0 = vnez %v6878_v55 }
 0x548   :  { %4301 = vmatprep.subr.mxu0 %v6463_v56  ;;  %v4452_v38 = vpop.permute.xlu1 %4451  ;;  %5368 = vmatmul.mubr.msk.f32.vlgmr.msra.gmra.mrb[4].mxu1 %vm1971_vm7, %v5362_v22  ;;  %v4450_v58 = vpop.permute.xlu0 %4449 }
 0x549   :  { %4302 = vmatpush1.msra.mxu0 %v6465_v43  ;;  %4372 = vmatprep.subr.mxu1 %v6473_v17  ;;  %v4456_v45 = vsel %vm6964_vm14, %v4450_v58, %v4452_v38  ;;  %vm6979_vm14 = vnez %v6884_v61 }
 0x54a   :  { %4373 = vmatpush1.msra.mxu1 %v6471_v49  ;;  %5373 = vmatprep.subr.msk.mxu0 %vm6965_vm3, %v4456_v45  ;;  %v5372_v49 = vld [vmem:[%s6763_s5 + $0x28] sm:$0xff]  ;;  %vm6980_vm3 = vcmp.lt.s32.totalorder %v5750_v11, 112  ;;  %s5614_s5 = smov [#allocation2]  }
 0x54b   :  { %4365 = vmatprep.mubr.f32.mxu0 %v6934_v13  ;;  %4436 = vmatprep.mubr.f32.mxu1 %v6934_v13  ;;  %s5214_s10 = sshll.u32 %s5614_s5, 4  ;;  %s5215_s10 = int_to_ptr.vmem [resolvable:$true] %s5214_s10 }
 0x54c   :  { %v4454_v50 = vpop.permute.xlu1 %4453  ;;  %v4448_v53 = vpop.permute.xlu0 %4447  ;;  %s5572_s1 = scalar_lea.vmem %s5215_s10, 512  ;;  %p5577_p1 = scmp.lt.s32.totalorder %s5215_s10, %s5215_s10 }
 0x54d   :  { %v4457_v42 = vsel %vm6966_vm15, %v4448_v53, %v4450_v58  ;;  %v4458_v56 = vsel %vm6967_vm2, %v4454_v50, %v4448_v53  ;;  %v4455_v7 = vsel %vm6969_vm12, %v4452_v38, %v4454_v50  ;;  %vm6981_vm15 = vnez %v6891_v20  ;;  %vm6982_vm2 = vmmov %vm6980_vm3  ;;  %p5573_p0 = scmp.ne.s32.totalorder %s5215_s10, %s5572_s1  ;;  %p5578_p2 = scmp.lt.s32.totalorder %s5572_s1, %s5572_s1 }
 0x54e   :  { %5376 = vmatprep.subr.msk.mxu1 %vm6968_vm11, %v4458_v56  ;;  %vm6983_vm11 = vmmov %vm6982_vm2  ;;  %vm6985_vm12 = vnez %v6984_v31 }
 0x54f   :  { %5370 = vmatmul.mubr.msk.f32.vlgmr.msra.gmra.mrb[4].mxu0 %vm1971_vm7, %v5369_v54  ;;  %p5579_p3 = por %p5578_p2, %p5577_p1 }
 0x550   :  { %5374 = vmatpush1.msk.msra.mxu0 %vm6970_vm10, %v4457_v42  ;;  %v4619_v43 = vpop.permute.xlu1 %4618  ;;  %5371 = vmatmul.mubr.msk.f32.vlgmr.msra.gmra.mrb[4].mxu1 %vm1971_vm7, %v5369_v54  ;;  %v4617_v39 = vpop.permute.xlu0 %4616  ;;  %vm6986_vm10 = vmmov %vm6982_vm2 }
 0x551   :  { %5377 = vmatpush1.msk.msra.mxu1 %vm6971_vm5, %v4455_v7  ;;  %v4623_v9 = vsel %vm6972_vm4, %v4617_v39, %v4619_v43  ;;  %4532 = vmatprep.mubr.f32.mxu0 %v6934_v13  ;;  %vm6988_vm5 = vnez %v6987_v14  ;;  %vm6990_vm4 = vnez %v6989_v23  ;;  %p5580_p4 = pnand %p5579_p3, %p5573_p0 }
 0x552   :  { %5380 = vmatprep.subr.msk.mxu0 %vm6973_vm6, %v4623_v9  ;;  %4603 = vmatprep.mubr.f32.mxu1 %v6934_v13  ;;  %vm6991_vm6 = vcmp.lt.s32.totalorder %v5750_v11, 111 }
 0x554   :  { %v4621_v27 = vpop.permute.xlu1 %4620  ;;  %v4615_v25 = vpop.permute.xlu0 %4614 }
 0x555   :  { %v4624_v32 = vsel %vm6974_vm8, %v4615_v25, %v4617_v39  ;;  %v4625_v17 = vsel %vm6975_vm9, %v4621_v27, %v4615_v25  ;;  %v4622_v40 = vsel %vm6977_vm1, %v4619_v43, %v4621_v27  ;;  %vm6993_vm8 = vnez %v6992_v33  ;;  %vm6994_vm9 = vmmov %vm6991_vm6 }
 0x556   :  { %5383 = vmatprep.subr.msk.mxu1 %vm6976_vm13, %v4625_v17  ;;  %vm6995_vm13 = vmmov %vm6991_vm6  ;;  %vm6997_vm1 = vnez %v6996_v35 }
 0x557   :  { %5375 = vmatmul.mubr.msk.f32.vlgmr.msra.gmra.mrb[4].mxu0 %vm1971_vm7, %v5372_v49 }
 0x558   :  { %5381 = vmatpush1.msk.msra.mxu0 %vm6978_vm0, %v4624_v32  ;;  %v4786_v60 = vpop.permute.xlu1 %4785  ;;  %5378 = vmatmul.mubr.msk.f32.vlgmr.msra.gmra.mrb[4].mxu1 %vm1971_vm7, %v5372_v49  ;;  %v4784_v4 = vpop.permute.xlu0 %4783  ;;  %vm6998_vm0 = vmmov %vm6991_vm6 }
 0x559   :  { %5384 = vmatpush1.msk.msra.mxu1 %vm6979_vm14, %v4622_v40  ;;  %v4790_v62 = vsel %vm6980_vm3, %v4784_v4, %v4786_v60  ;;  %4699 = vmatprep.mubr.f32.mxu0 %v6934_v13  ;;  %vm7000_vm14 = vnez %v6999_v12  ;;  %vm7002_vm3 = vnez %v7001_v16 }
 0x55a   :  { %5387 = vmatprep.subr.msk.mxu0 %vm6981_vm15, %v4790_v62  ;;  %4770 = vmatprep.mubr.f32.mxu1 %v6934_v13 }
 0x55c   :  { %v4788_v57 = vpop.permute.xlu1 %4787  ;;  %v4782_v55 = vpop.permute.xlu0 %4781 }
 0x55d   :  { %v4791_v61 = vsel %vm6982_vm2, %v4782_v55, %v4784_v4  ;;  %v4792_v19 = vsel %vm6983_vm11, %v4788_v57, %v4782_v55  ;;  %v4789_v20 = vsel %vm6986_vm10, %v4786_v60, %v4788_v57 }
 0x55e   :  { %5390 = vmatprep.subr.msk.mxu1 %vm6985_vm12, %v4792_v19 }
 0x55f   :  { %5382 = vmatmul.mubr.msk.f32.vlgmr.msra.gmra.mrb[4].mxu0 %vm1971_vm7, %v5379_v6 }
 0x560   :  { %5388 = vmatpush1.msk.msra.mxu0 %vm6988_vm5, %v4791_v61  ;;  %v4953_v59 = vpop.permute.xlu1 %4952  ;;  %5385 = vmatmul.mubr.msk.f32.vlgmr.msra.gmra.mrb[4].mxu1 %vm1971_vm7, %v5379_v6  ;;  %v4951_v48 = vpop.permute.xlu0 %4950 }
 0x561   :  { %5391 = vmatpush1.msk.msra.mxu1 %vm6990_vm4, %v4789_v20  ;;  %v4957_v29 = vsel %vm6991_vm6, %v4951_v48, %v4953_v59  ;;  %4866 = vmatprep.mubr.f32.mxu0 %v6934_v13 }
 0x562   :  { %5394 = vmatprep.subr.msk.mxu0 %vm6993_vm8, %v4957_v29  ;;  %4937 = vmatprep.mubr.f32.mxu1 %v6934_v13 }
 0x564   :  { %v4955_v26 = vpop.permute.xlu1 %4954  ;;  %v4949_v28 = vpop.permute.xlu0 %4948 }
 0x565   :  { %v4958_v46 = vsel %vm6994_vm9, %v4949_v28, %v4951_v48  ;;  %v4959_v36 = vsel %vm6995_vm13, %v4955_v26, %v4949_v28  ;;  %v4956_v41 = vsel %vm6998_vm0, %v4953_v59, %v4955_v26 }
 0x566   :  { %5397 = vmatprep.subr.msk.mxu1 %vm6997_vm1, %v4959_v36 }
 0x567   :  { %5389 = vmatmul.mubr.msk.f32.vlgmr.msra.gmra.mrb[4].mxu0 %vm1971_vm7, %v5386_v30 }
 0x568   :  { %5395 = vmatpush1.msk.msra.mxu0 %vm7000_vm14, %v4958_v46  ;;  %5392 = vmatmul.mubr.msk.f32.vlgmr.msra.gmra.mrb[4].mxu1 %vm1971_vm7, %v5386_v30 }
 0x569   :  { %5398 = vmatpush1.msk.msra.mxu1 %vm7002_vm3, %v4956_v41  ;;  %5033 = vmatprep.mubr.f32.mxu0 %v6934_v13 }
 0x56a   :  { %5104 = vmatprep.mubr.f32.mxu1 %v6934_v13 }
 0x56f   :  { %5396 = vmatmul.mubr.msk.f32.vlgmr.msra.gmra.mrb[4].mxu0 %vm1971_vm7, %v5393_v47 }
 0x570   :  { %5399 = vmatmul.mubr.msk.f32.vlgmr.msra.gmra.mrb[4].mxu1 %vm1971_vm7, %v5393_v47 }
 0x642   :  { %v5035_v11 = vpop.f32.mrb[4].mxu0 }
 0x643   :  { %v5115_v52 = vadd.f32 %v5035_v11, %v6197_v34  ;;  %v5037_v51 = vpop.f32.mrb[5].mxu0  ;;  %v5106_v10 = vpop.f32.mrb[4].mxu1 }
 0x644   :  { %v5116_v15 = vadd.f32 %v5037_v51, %v6199_v1  ;;  %v6731_v5 = vadd.f32 %v5106_v10, %v6203_v37  ;;  %v5108_v63 = vpop.f32.mrb[5].mxu1 }
 0x645   :  { %v5123_v13 = vmin.f32 %v5115_v52, 20.0  ;;  %v6734_v3 = vadd.f32 %v5108_v63, %v6205_v44  ;;  %vm5119_vm7 = vcmp.gt.f32.partialorder %v5115_v52, 20.0 }
 0x646   :  { %v5124_v2 = vmin.f32 %v5116_v15, 20.0  ;;  %v5125_v18 = vmin.f32 %v6731_v5, 20.0  ;;  %vm5120_vm15 = vcmp.gt.f32.partialorder %v5116_v15, 20.0  ;;  %vm5121_vm2 = vcmp.gt.f32.partialorder %v6731_v5, 20.0 }
 0x647   :  { %v5127_v24 = vmul.f32 1.442695, %v5123_v13  ;;  %v5126_v22 = vmin.f32 %v6734_v3, 20.0  ;;  %vm5122_vm4 = vcmp.gt.f32.partialorder %v6734_v3, 20.0 }
 0x648   :  { %v5129_v0 = vmul.f32 1.442695, %v5124_v2  ;;  %v5131_v34 = vmul.f32 1.442695, %v5125_v18 }
 0x649   :  { %5553 = vpow2.f32 %v5127_v24  ;;  %v5133_v21 = vmul.f32 1.442695, %v5126_v22 }
 0x64a   :  { %5555 = vpow2.f32 %v5129_v0 }
 0x64b   :  { %5557 = vpow2.f32 %v5131_v34 }
 0x64c   :  { %5559 = vpow2.f32 %v5133_v21 }
 0x653   :  { %v5554_v1 = vpop.eup %5553 }
 0x654   :  { %v5556_v37 = vpop.eup %5555  ;;  %v5135_v8 = vadd.f32 1.0, %v5554_v1  ;;  %v5138_v53 = vmul.f32 -0.5, %v5554_v1  ;;  %v5141_v43 = vand.u32 2147483647, %v5554_v1 }
 0x655   :  { %v5558_v38 = vpop.eup %5557  ;;  %v5144_v58 = vadd.f32 1.0, %v5556_v37  ;;  %v5147_v54 = vmul.f32 -0.5, %v5556_v37  ;;  %v5150_v9 = vand.u32 2147483647, %v5556_v37 }
 0x656   :  { %v5560_v44 = vpop.eup %5559  ;;  %5561 = vlog2.f32 %v5135_v8  ;;  %v5153_v45 = vadd.f32 1.0, %v5558_v38  ;;  %v5156_v42 = vmul.f32 -0.5, %v5558_v38  ;;  %v5139_v7 = vadd.f32 1.0, %v5138_v53 }
 0x657   :  { %5563 = vlog2.f32 %v5144_v58  ;;  %v5162_v50 = vadd.f32 1.0, %v5560_v44  ;;  %v5165_v56 = vmul.f32 -0.5, %v5560_v44  ;;  %v5148_v39 = vadd.f32 1.0, %v5147_v54 }
 0x658   :  { %5565 = vlog2.f32 %v5153_v45  ;;  %v5157_v27 = vadd.f32 1.0, %v5156_v42  ;;  %v5159_v49 = vand.u32 2147483647, %v5558_v38  ;;  %v5140_v60 = vmul.f32 %v5554_v1, %v5139_v7 }
 0x659   :  { %5567 = vlog2.f32 %v5162_v50  ;;  %v5166_v32 = vadd.f32 1.0, %v5165_v56  ;;  %vm5142_vm11 = vcmp.lt.f32.partialorder %v5141_v43, 0.0004427343  ;;  %v5149_v57 = vmul.f32 %v5556_v37, %v5148_v39 }
 0x65a   :  { %v5168_v55 = vand.u32 2147483647, %v5560_v44  ;;  %vm5151_vm12 = vcmp.lt.f32.partialorder %v5150_v9, 0.0004427343  ;;  %v5158_v19 = vmul.f32 %v5558_v38, %v5157_v27  ;;  %vm5160_vm10 = vcmp.lt.f32.partialorder %v5159_v49, 0.0004427343 }
 0x65b   :  { %v5167_v59 = vmul.f32 %v5560_v44, %v5166_v32 }
 0x65c   :  { %vm5169_vm5 = vcmp.lt.f32.partialorder %v5168_v55, 0.0004427343 }
 0x660   :  { %v5562_v25 = vpop.eup %5561 }
 0x661   :  { %v5564_v17 = vpop.eup %5563  ;;  %v5137_v40 = vmul.f32 0.6931472, %v5562_v25 }
 0x662   :  { %v5566_v4 = vpop.eup %5565  ;;  %v5146_v62 = vmul.f32 0.6931472, %v5564_v17 }
 0x663   :  { %v5143_v6 = vsel %vm5142_vm11, %v5140_v60, %v5137_v40  ;;  %v5155_v61 = vmul.f32 0.6931472, %v5566_v4  ;;  %v5568_v31 = vpop.eup %5567 }
 0x664   :  { %v5171_v20 = vsel %vm5119_vm7, %v5115_v52, %v5143_v6  ;;  %v5152_v14 = vsel %vm5151_vm12, %v5149_v57, %v5146_v62  ;;  %v5164_v33 = vmul.f32 0.6931472, %v5568_v31 }
 0x665   :  { %v5180_v48 = vmul.f32 %v5171_v20, %v5171_v20  ;;  %v5172_v23 = vsel %vm5120_vm15, %v5116_v15, %v5152_v14  ;;  %v5161_v29 = vsel %vm5160_vm10, %v5158_v19, %v5155_v61 }
 0x666   :  { %v5175_v26 = vadd.f32 %v5172_v23, %v5171_v20  ;;  %v5181_v28 = vmul.f32 %v5172_v23, %v5172_v23  ;;  %v5173_v30 = vsel %vm5121_vm2, %v6731_v5, %v5161_v29  ;;  %v5170_v46 = vsel %vm5169_vm5, %v5167_v59, %v5164_v33 }
 0x667   :  { %v5182_v36 = vmul.f32 %v5173_v30, %v5173_v30  ;;  %v5174_v35 = vsel %vm5122_vm4, %v6734_v3, %v5170_v46 }
 0x668   :  { %v5176_v41 = vadd.f32 %v5175_v26, %v5173_v30  ;;  %v5184_v12 = vadd.f32 %v5181_v28, %v5180_v48  ;;  %v5183_v47 = vmul.f32 %v5174_v35, %v5174_v35 }
 0x66a   :  { %v5177_v16 = vadd.f32 %v5176_v41, %v5174_v35  ;;  %v5185_v11 = vadd.f32 %v5184_v12, %v5182_v36 }
 0x66c   :  { %5178 = vadd.xlane.f32.xlu0 %v5177_v16  ;;  %v5186_v52 = vadd.f32 %v5185_v11, %v5183_v47 }
 0x66e   :  { %5187 = vadd.xlane.f32.xlu1 %v5186_v52 }
 0x6f9   :  { %v5179_v51 = vpop.xlane.xlu0 %5178 }
 0x6fa   :  { %v5189_v10 = vmul.f32 0.001953125, %v5179_v51 }
 0x6fb   :  { %v5188_v15 = vpop.xlane.xlu1 %5187 }
 0x6fc   :  { %v5190_v63 = vmul.f32 0.001953125, %v5188_v15  ;;  %v5191_v5 = vmul.f32 %v5189_v10, %v5189_v10  ;;  %v5194_v3 = vsub.f32 %v5171_v20, %v5189_v10  ;;  %v5195_v24 = vsub.f32 %v5172_v23, %v5189_v10 }
 0x6fd   :  { %v5196_v22 = vsub.f32 %v5173_v30, %v5189_v10  ;;  %v5197_v0 = vsub.f32 %v5174_v35, %v5189_v10 }
 0x6fe   :  { %v5192_v13 = vsub.f32 %v5190_v63, %v5191_v5 }
 0x700   :  { %v5193_v2 = vmax.f32 %v5192_v13, 0.0 }
 0x702   :  { %v5198_v18 = vadd.f32 1e-05, %v5193_v2 }
 0x704   :  { %5569 = vrsqrt.f32 %v5198_v18 }
 0x70e   :  { %v5570_v34 = vpop.eup %5569 }
 0x70f   :  { %v5200_v21 = vmul.f32 %v5570_v34, %v5194_v3  ;;  %v5201_v1 = vmul.f32 %v5570_v34, %v5195_v24  ;;  %v5202_v37 = vmul.f32 %v5570_v34, %v5196_v22  ;;  %v5203_v8 = vmul.f32 %v5570_v34, %v5197_v0 }
 0x711   :  { %5204 = vst [vmem:[#allocation2] sm:$0xff] %v5200_v21  ;;  %5205 = vst [vmem:[#allocation2 + $0x8] sm:$0xff] %v5201_v1 }
 0x712   :  { %5206 = vst [vmem:[#allocation2 + $0x10] sm:$0xff] %v5202_v37  ;;  %5207 = vst [vmem:[#allocation2 + $0x18] sm:$0xff] %v5203_v8 }
 0x713   :  { %5583 = shalt.err (!%p5580_p4)
}
 0x714   :  { %s5584_s2 = scalar_lea.hbm %s6764_s6, 512 }
 0x715   :  { %p5585_p5 = scmp.ne.s32.totalorder %s6764_s6, %s5584_s2  ;;  %p5588_p6 = scmp.lt.u32.totalorder %s5584_s2, %s6764_s6 }
 0x717   :  { %p5590_p7 = pnand %p5588_p6, %p5585_p5 }
 0x719   :  { %5593 = shalt.err (!%p5590_p7)
}
 0x71a   :  { %5217 = dma.vmem_to_hbm [thread:$0]  %s5215_s10, 512, %s6764_s6, [#allocation3]  }
 0x71b   :  { %5594 = dma.done.wait [#allocation3], 512  }
 0x71c   :  { %5595 = vsyncadd [#allocation3], 4294966784 }
 0x71d   :  { %5221 = vsyncpa [#allocation3], 1 }

</bundles_post_ra>
